<compile_context>
chip_gen: v6e
topology: v6e:2x2x1
jax: 0.10.0
libtpu: 0.0.40
codegen_flags: <defaults>
</compile_context>

<pallas_src>
import functools

import jax
import jax.numpy as jnp
from jax import lax
from jax.experimental import pallas as pl
from jax.experimental.pallas import tpu as pltpu


# ----------------------------------------------------------------------------
# helpers
# ----------------------------------------------------------------------------
def round_up(x, m):
    return ((x + m - 1) // m) * m


def _pick_tile(dim, target, quantum):
    """Largest multiple of `quantum` dividing `dim`, no larger than ~target."""
    assert dim % quantum == 0, (dim, quantum)
    t = min(dim, max(quantum, (min(dim, target) // quantum) * quantum))
    while dim % t:
        t -= quantum
    return t


def fold_bn(gamma, beta, mean, var, eps=1e-5):
    scale = gamma / jnp.sqrt(var + eps)
    bias = beta - mean * scale
    return scale, bias


# ----------------------------------------------------------------------------
# Pallas kernel 1: pointwise (1x1) conv -> relu((X @ W) + b) [+ residual]
#   BN scale pre-folded into W.  X/W/residual bf16, accumulate/epilogue in f32.
# ----------------------------------------------------------------------------
def _pointwise_kernel(x_ref, w_ref, b_ref, *rest, relu, has_res):
    if has_res:
        r_ref, o_ref, acc_ref = rest
    else:
        o_ref, acc_ref = rest

    @pl.when(pl.program_id(2) == 0)
    def _init():
        acc_ref[...] = jnp.zeros_like(acc_ref)

    acc_ref[...] += jnp.dot(x_ref[...], w_ref[...],
                            preferred_element_type=jnp.float32)

    @pl.when(pl.program_id(2) == pl.num_programs(2) - 1)
    def _epilogue():
        y = acc_ref[...] + b_ref[...]
        if relu:
            y = jnp.maximum(y, 0.0)
        if has_res:
            y = y + r_ref[...].astype(jnp.float32)
        o_ref[...] = y.astype(o_ref.dtype)


def pointwise_conv_bn(x2d, w, b, *, relu=True, residual=None,
                      out_dtype=jnp.bfloat16):
    """x2d: (M, K) activations; w: (K, N) bf16 (scale folded); b: (1, N) f32."""
    M, K = x2d.shape
    Kw, Nc = w.shape
    assert K == Kw and K % 128 == 0 and Nc % 128 == 0

    Mp = round_up(M, 8)
    if Mp != M:
        x2d = jnp.pad(x2d, ((0, Mp - M), (0, 0)))
        if residual is not None:
            residual = jnp.pad(residual, ((0, Mp - M), (0, 0)))

    tm = _pick_tile(Mp, 256, 8)
    tn = _pick_tile(Nc, 256, 128)
    tk = _pick_tile(K, 512, 128)
    grid = (Mp // tm, Nc // tn, K // tk)

    in_specs = [
        pl.BlockSpec((tm, tk), lambda i, j, k: (i, k)),
        pl.BlockSpec((tk, tn), lambda i, j, k: (k, j)),
        pl.BlockSpec((1, tn), lambda i, j, k: (0, j)),
    ]
    args = [x2d.astype(jnp.bfloat16), w, b]
    if residual is not None:
        in_specs.append(pl.BlockSpec((tm, tn), lambda i, j, k: (i, j)))
        args.append(residual.astype(jnp.bfloat16))

    kernel = functools.partial(_pointwise_kernel, relu=relu,
                               has_res=residual is not None)
    n_res = 1 if residual is not None else 0
    cost = pl.CostEstimate(
        flops=2 * Mp * Nc * K,
        transcendentals=0,
        bytes_accessed=2 * (Mp * K + K * Nc + (1 + n_res) * Mp * Nc) + 4 * Nc,
    )
    out = pl.pallas_call(
        kernel,
        out_shape=jax.ShapeDtypeStruct((Mp, Nc), out_dtype),
        grid=grid,
        in_specs=in_specs,
        out_specs=pl.BlockSpec((tm, tn), lambda i, j, k: (i, j)),
        scratch_shapes=[pltpu.VMEM((tm, tn), jnp.float32)],
        compiler_params=pltpu.CompilerParams(
            dimension_semantics=("parallel", "parallel", "arbitrary"),
            vmem_limit_bytes=32 * 1024 * 1024),
        cost_estimate=cost,
    )(*args)
    return out[:M] if Mp != M else out


# ----------------------------------------------------------------------------
# Pallas kernel 2: 3x3 conv as a 9-tap accumulating matmul (no im2col in HBM).
#   Input arrives as s*s "parity slabs" of the zero-padded image; tap (kh, kw)
#   is the unit-stride window slab[kh%s][kh//s : kh//s+Ho, kw//s : kw//s+Wo].
# ----------------------------------------------------------------------------
def _conv3x3_kernel(xp_ref, w_ref, b_ref, o_ref, *, stride, ksize, Ho, Wo, relu):
    # NOTE: Wo here is the lane/sublane-friendly (padded to mult. of 8) width.
    s = stride
    Cp = xp_ref.shape[-1]
    Mimg = Ho * Wo
    # Load each parity slab once; the f32 copy keeps the per-tap slice/reshape on
    # the native (8, 128) layout (cheap), then cast back to bf16 for the MXU.
    slabs = [xp_ref[p].astype(jnp.float32) for p in range(s * s)]
    acc = jnp.zeros((Mimg, o_ref.shape[-1]), jnp.float32)
    for kh in range(ksize):
        for kw in range(ksize):
            p = (kh % s) * s + (kw % s)
            qh, qw = kh // s, kw // s
            x_tap = slabs[p][qh:qh + Ho, qw:qw + Wo, :]
            lhs = x_tap.reshape(Mimg, Cp).astype(jnp.bfloat16)
            acc = acc + jnp.dot(lhs, w_ref[kh * ksize + kw],
                                preferred_element_type=jnp.float32)
    y = acc + b_ref[...]
    if relu:
        y = jnp.maximum(y, 0.0)
    o_ref[...] = y.astype(o_ref.dtype)


def conv3x3_bn(x_nhwc, w_taps, b, *, stride, relu=True, ksize=3, pad=1):
    """x_nhwc: (N, H, W, Cp) bf16 (Cp mult of 128); w_taps: (9, Cp, Cout) bf16."""
    N, H, W, Cp = x_nhwc.shape
    T, Cpw, Cout = w_taps.shape
    assert T == ksize * ksize and Cpw == Cp and Cp % 128 == 0 and Cout % 128 == 0
    s = stride

    Ho = (H + 2 * pad - ksize) // s + 1
    Wo = (W + 2 * pad - ksize) // s + 1
    Wo_pad = round_up(Wo, 8)           # compute a few extra (discarded) columns
    q = (ksize - 1) // s
    Hslab, Wslab = Ho + q, Wo_pad + q

    # Zero pad for the conv, then extend/trim to exactly (s*Hslab, s*Wslab).
    xpad = jnp.pad(x_nhwc, ((0, 0), (pad, pad), (pad, pad), (0, 0)))
    Hp, Wp = H + 2 * pad, W + 2 * pad
    th, tw = s * Hslab, s * Wslab
    xpad = jnp.pad(xpad, ((0, 0), (0, max(0, th - Hp)), (0, max(0, tw - Wp)),
                          (0, 0)))[:, :th, :tw, :]
    # Parity decomposition: slab[rh, rw][i, j] = xpad[i*s + rh, j*s + rw].
    xps = xpad.reshape(N, Hslab, s, Wslab, s, Cp)
    xps = jnp.transpose(xps, (2, 4, 0, 1, 3, 5)).reshape(s * s, N, Hslab, Wslab, Cp)

    tn = _pick_tile(Cout, 256, 128)
    Mimg = Ho * Wo_pad
    grid = (N, Cout // tn)

    kernel = functools.partial(_conv3x3_kernel, stride=s, ksize=ksize,
                               Ho=Ho, Wo=Wo_pad, relu=relu)
    cost = pl.CostEstimate(
        flops=2 * N * Mimg * Cp * Cout * ksize * ksize,
        transcendentals=0,
        bytes_accessed=2 * (xps.size + w_taps.size + N * Mimg * Cout) + 4 * Cout,
    )
    out = pl.pallas_call(
        kernel,
        out_shape=jax.ShapeDtypeStruct((N, Mimg, Cout), jnp.bfloat16),
        grid=grid,
        in_specs=[
            pl.BlockSpec((s * s, None, Hslab, Wslab, Cp),
                         lambda n, j: (0, n, 0, 0, 0)),
            pl.BlockSpec((ksize * ksize, Cp, tn), lambda n, j: (0, 0, j)),
            pl.BlockSpec((1, tn), lambda n, j: (0, j)),
        ],
        out_specs=pl.BlockSpec((None, Mimg, tn), lambda n, j: (n, 0, j)),
        compiler_params=pltpu.CompilerParams(
            dimension_semantics=("parallel", "parallel"),
            vmem_limit_bytes=32 * 1024 * 1024),
        cost_estimate=cost,
    )(xps.astype(jnp.bfloat16), w_taps, b)

    out = out.reshape(N, Ho, Wo_pad, Cout)[:, :, :Wo, :]
    return out, Ho, Wo


# ----------------------------------------------------------------------------
# Parameter prep: fold BN scale into weights, pad channels to 128, cast bf16.
# ----------------------------------------------------------------------------
def make_conv_params(key, c_in, c_out, ksize):
    kw, kg, kb, km, kv = jax.random.split(key, 5)
    fan_in = c_in * ksize * ksize
    w = jax.random.normal(kw, (c_out, c_in, ksize, ksize), jnp.float32) * (
        2.0 / fan_in) ** 0.5
    gamma = 1.0 + 0.1 * jax.random.normal(kg, (c_out,), jnp.float32)
    beta = 0.1 * jax.random.normal(kb, (c_out,), jnp.float32)
    mean = 0.05 * jax.random.normal(km, (c_out,), jnp.float32)
    var = 1.0 + 0.1 * jax.random.uniform(kv, (c_out,), jnp.float32)
    return dict(w=w, gamma=gamma, beta=beta, mean=mean, var=var)


def _prep_1x1(p, kin, kin_pad, kout, kout_pad):
    s, b = fold_bn(p["gamma"], p["beta"], p["mean"], p["var"])
    w = p["w"].reshape(kout, kin)
    w = (w * s[:, None]).T                              # (Cin, Cout), scale folded
    wp = jnp.zeros((kin_pad, kout_pad), jnp.float32).at[:kin, :kout].set(w)
    bp = jnp.zeros((1, kout_pad), jnp.float32).at[0, :kout].set(b)
    return wp.astype(jnp.bfloat16), bp


def _prep_3x3(p, kin, kin_pad, kout, kout_pad, ksize=3):
    s, b = fold_bn(p["gamma"], p["beta"], p["mean"], p["var"])
    w = p["w"] * s[:, None, None, None]                 # (Cout, Cin, kh, kw)
    w = jnp.transpose(w, (2, 3, 1, 0)).reshape(ksize * ksize, kin, kout)
    wp = jnp.zeros((ksize * ksize, kin_pad, kout_pad), jnp.float32)
    wp = wp.at[:, :kin, :kout].set(w)
    bp = jnp.zeros((1, kout_pad), jnp.float32).at[0, :kout].set(b)
    return wp.astype(jnp.bfloat16), bp


def prepare_params(params, in_channels, out_channels, expansion=4):
    c1 = c2 = out_channels
    c3 = expansion * out_channels
    cfg = dict(
        cin=in_channels, c1=c1, c2=c2, c3=c3,
        cin_pad=round_up(in_channels, 128), c1_pad=round_up(c1, 128),
        c2_pad=round_up(c2, 128), c3_pad=round_up(c3, 128),
    )
    w1, b1 = _prep_1x1(params["conv1"], in_channels, cfg["cin_pad"], c1, cfg["c1_pad"])
    w2, b2 = _prep_3x3(params["conv2"], c1, cfg["c1_pad"], c2, cfg["c2_pad"])
    w3, b3 = _prep_1x1(params["conv3"], c2, cfg["c2_pad"], c3, cfg["c3_pad"])
    prep = dict(cfg=cfg, w1=w1, b1=b1, w2=w2, b2=b2, w3=w3, b3=b3,
                ws=None, bs=None)
    if params.get("shortcut") is not None:
        ws, bs = _prep_1x1(params["shortcut"], in_channels, cfg["cin_pad"],
                           c3, cfg["c3_pad"])
        prep["ws"], prep["bs"] = ws, bs
    return prep


# ----------------------------------------------------------------------------
# Bottleneck forward (NCHW in / NCHW out)
# ----------------------------------------------------------------------------
def bottleneck_forward(x_nchw, prep, stride):
    cfg = prep["cfg"]
    N, Cin, H, W = x_nchw.shape
    x = jnp.transpose(x_nchw, (0, 2, 3, 1)).astype(jnp.bfloat16)
    x = jnp.pad(x, ((0, 0), (0, 0), (0, 0), (0, cfg["cin_pad"] - Cin)))

    # conv1: 1x1, stride 1, BN+ReLU
    y1 = pointwise_conv_bn(x.reshape(N * H * W, cfg["cin_pad"]),
                           prep["w1"], prep["b1"], relu=True,
                           out_dtype=jnp.bfloat16)
    y1 = y1.reshape(N, H, W, cfg["c1_pad"])

    # conv2: 3x3, stride, pad 1, BN+ReLU (direct tap-accumulation, no im2col)
    y2, Ho, Wo = conv3x3_bn(y1, prep["w2"], prep["b2"], stride=stride, relu=True)

    # shortcut branch
    xs = x[:, ::stride, ::stride, :]
    if prep["ws"] is not None:
        res = pointwise_conv_bn(xs.reshape(N * Ho * Wo, cfg["cin_pad"]),
                                prep["ws"], prep["bs"], relu=True,
                                out_dtype=jnp.bfloat16)
    else:
        # identity shortcut (only when stride==1 and Cin == expansion*out)
        res = xs.reshape(N * Ho * Wo, cfg["c3_pad"])

    # conv3: 1x1, BN+ReLU, residual add fused into the epilogue
    y3 = pointwise_conv_bn(y2.reshape(N * Ho * Wo, cfg["c2_pad"]),
                           prep["w3"], prep["b3"], relu=True,
                           residual=res, out_dtype=jnp.float32)
    y3 = y3.reshape(N, Ho, Wo, cfg["c3_pad"])[..., :cfg["c3"]]
    return jnp.transpose(y3, (0, 3, 1, 2))


# ----------------------------------------------------------------------------
# Pure-JAX reference with matched numerics (bf16 inputs, f32 accumulation)
# ----------------------------------------------------------------------------
def reference_forward(x_nchw, prep, stride):
    cfg = prep["cfg"]
    N, Cin, H, W = x_nchw.shape
    x = jnp.transpose(x_nchw, (0, 2, 3, 1)).astype(jnp.bfloat16)
    x = jnp.pad(x, ((0, 0), (0, 0), (0, 0), (0, cfg["cin_pad"] - Cin)))
    x = x.astype(jnp.float32)

    def pw(x2d, w, b, relu=True, res=None):
        y = jnp.dot(x2d, w.astype(jnp.float32)) + b
        if relu:
            y = jnp.maximum(y, 0.0)
        if res is not None:
            y = y + res
        return y

    y1 = pw(x.reshape(-1, cfg["cin_pad"]), prep["w1"], prep["b1"])
    y1 = y1.astype(jnp.bfloat16).astype(jnp.float32)
    y1 = y1.reshape(N, H, W, cfg["c1_pad"])

    w2 = prep["w2"].reshape(3, 3, cfg["c1_pad"], cfg["c2_pad"]).astype(jnp.float32)
    y2 = lax.conv_general_dilated(
        y1, w2, (stride, stride), [(1, 1), (1, 1)],
        dimension_numbers=("NHWC", "HWIO", "NHWC"))
    y2 = jnp.maximum(y2 + prep["b2"], 0.0)
    y2 = y2.astype(jnp.bfloat16).astype(jnp.float32)
    Ho, Wo = y2.shape[1], y2.shape[2]

    xs = x[:, ::stride, ::stride, :]
    if prep["ws"] is not None:
        res = pw(xs.reshape(N * Ho * Wo, cfg["cin_pad"]), prep["ws"], prep["bs"])
        res = res.astype(jnp.bfloat16).astype(jnp.float32)
    else:
        res = xs.reshape(N * Ho * Wo, cfg["c3_pad"])

    y3 = pw(y2.reshape(N * Ho * Wo, cfg["c2_pad"]), prep["w3"], prep["b3"],
            res=res)
    y3 = y3.reshape(N, Ho, Wo, cfg["c3_pad"])[..., :cfg["c3"]]
    return jnp.transpose(y3, (0, 3, 1, 2))


# ----------------------------------------------------------------------------
if __name__ == "__main__":
    EXPANSION = 4
    batch, in_channels, out_channels = 2, 16, 8
    H = W = 8

    key = jax.random.PRNGKey(0)
    kx, k1, k2, k3, ks = jax.random.split(key, 5)
    x = jax.random.normal(kx, (batch, in_channels, H, W), jnp.float32)

    for stride in (1, 2):
        params = {
            "conv1": make_conv_params(k1, in_channels, out_channels, 1),
            "conv2": make_conv_params(k2, out_channels, out_channels, 3),
            "conv3": make_conv_params(k3, out_channels, EXPANSION * out_channels, 1),
            "shortcut": (
                make_conv_params(ks, in_channels, EXPANSION * out_channels, 1)
                if (stride != 1 or in_channels != EXPANSION * out_channels)
                else None
            ),
        }
        prep = prepare_params(params, in_channels, out_channels, EXPANSION)

        fwd = jax.jit(functools.partial(bottleneck_forward, prep=prep,
                                        stride=stride))
        out = jax.block_until_ready(fwd(x))

        ref = reference_forward(x, prep, stride)
        assert out.shape == (batch, EXPANSION * out_channels,
                             H // stride, W // stride), out.shape
        err = float(jnp.max(jnp.abs(out - ref)))
        assert jnp.allclose(out, ref, atol=5e-3, rtol=5e-3), err

    print("KERNEL_OK")
</pallas_src>

<mosaic_0001>
module attributes {stable_mosaic.version = 11 : i64} {
  func.func @_pointwise_kernel(%arg0: i32, %arg1: i32, %arg2: i32, %arg3: memref<128x128xbf16, #tpu.memory_space<vmem>>, %arg4: memref<128x128xbf16, #tpu.memory_space<vmem>>, %arg5: memref<1x128xf32, #tpu.memory_space<vmem>>, %arg6: memref<128x128xbf16, #tpu.memory_space<vmem>>, %arg7: memref<128x128xf32, #tpu.memory_space<vmem>>) attributes {dimension_semantics = [#tpu.dimension_semantics<parallel>, #tpu.dimension_semantics<parallel>, #tpu.dimension_semantics<arbitrary>], iteration_bounds = array<i64: 1, 1, 1>, scalar_prefetch = 0 : i64, scratch_operands = 1 : i64, tpu.core_type = #tpu.core_type<tc>, window_params = [{transform_indices = @transform_0, window_bounds = array<i64: 128, 128>}, {transform_indices = @transform_1, window_bounds = array<i64: 128, 128>}, {transform_indices = @transform_2, window_bounds = array<i64: 1, 128>}, {transform_indices = @transform_3, window_bounds = array<i64: 128, 128>}]} {
    %c0_i32 = arith.constant 0 : i32
    %0 = arith.cmpi eq, %arg2, %c0_i32 : i32
    %1 = arith.extui %0 : i1 to i32
    %c0_i32_0 = arith.constant 0 : i32
    %2 = arith.cmpi ne, %1, %c0_i32_0 : i32
    scf.if %2 {
      %cst_10 = arith.constant 0.000000e+00 : f32
      %12 = vector.broadcast %cst_10 : f32 to vector<128x128xf32>
      %c0_11 = arith.constant 0 : index
      %c0_12 = arith.constant 0 : index
      %13 = vector.load %arg7[%c0_11, %c0_12] : memref<128x128xf32, #tpu.memory_space<vmem>>, vector<128x128xf32>
      tpu.vector_store %arg7[%c0_11, %c0_12], %12 {strides = array<i32>} : memref<128x128xf32, #tpu.memory_space<vmem>>, vector<128x128xf32>,
    } else {
    }
    %c0 = arith.constant 0 : index
    %c0_1 = arith.constant 0 : index
    %3 = vector.load %arg7[%c0, %c0_1] : memref<128x128xf32, #tpu.memory_space<vmem>>, vector<128x128xf32>
    %c0_2 = arith.constant 0 : index
    %c0_3 = arith.constant 0 : index
    %4 = vector.load %arg3[%c0_2, %c0_3] : memref<128x128xbf16, #tpu.memory_space<vmem>>, vector<128x128xbf16>
    %c0_4 = arith.constant 0 : index
    %c0_5 = arith.constant 0 : index
    %5 = vector.load %arg4[%c0_4, %c0_5] : memref<128x128xbf16, #tpu.memory_space<vmem>>, vector<128x128xbf16>
    %cst = arith.constant dense<0.000000e+00> : vector<128x128xf32>
    %6 = tpu.matmul %4, %5, %cst {dimension_numbers = #tpu.dot_dimension_numbers<[1], [0], [0], [1], [0, 0, 1, 1], [], []>} : vector<128x128xbf16>, vector<128x128xbf16>, vector<128x128xf32> -> vector<128x128xf32>
    %7 = arith.addf %3, %6 : vector<128x128xf32>
    %c0_6 = arith.constant 0 : index
    %c0_7 = arith.constant 0 : index
    %8 = vector.load %arg7[%c0_6, %c0_7] : memref<128x128xf32, #tpu.memory_space<vmem>>, vector<128x128xf32>
    tpu.vector_store %arg7[%c0_6, %c0_7], %7 {strides = array<i32>} : memref<128x128xf32, #tpu.memory_space<vmem>>, vector<128x128xf32>,
    %c0_i32_8 = arith.constant 0 : i32
    %9 = arith.cmpi eq, %arg2, %c0_i32_8 : i32
    %10 = arith.extui %9 : i1 to i32
    %c0_i32_9 = arith.constant 0 : i32
    %11 = arith.cmpi ne, %10, %c0_i32_9 : i32
    scf.if %11 {
      %c0_10 = arith.constant 0 : index
      %c0_11 = arith.constant 0 : index
      %12 = vector.load %arg7[%c0_10, %c0_11] : memref<128x128xf32, #tpu.memory_space<vmem>>, vector<128x128xf32>
      %c0_12 = arith.constant 0 : index
      %c0_13 = arith.constant 0 : index
      %13 = vector.load %arg5[%c0_12, %c0_13] : memref<1x128xf32, #tpu.memory_space<vmem>>, vector<1x128xf32>
      %14 = vector.broadcast %13 : vector<1x128xf32> to vector<128x128xf32>
      %15 = arith.addf %12, %14 : vector<128x128xf32>
      %cst_14 = arith.constant 0.000000e+00 : f32
      %16 = vector.broadcast %cst_14 : f32 to vector<128x128xf32>
      %17 = arith.maximumf %15, %16 : vector<128x128xf32>
      %18 = arith.truncf %17 : vector<128x128xf32> to vector<128x128xbf16>
      %c0_15 = arith.constant 0 : index
      %c0_16 = arith.constant 0 : index
      %19 = vector.load %arg6[%c0_15, %c0_16] : memref<128x128xbf16, #tpu.memory_space<vmem>>, vector<128x128xbf16>
      tpu.vector_store %arg6[%c0_15, %c0_16], %18 {strides = array<i32>} : memref<128x128xbf16, #tpu.memory_space<vmem>>, vector<128x128xbf16>,
    } else {
    }
    return
  }
  func.func @transform_0(%arg0: i32, %arg1: i32, %arg2: i32) -> (i32, i32) {
    %c0_i32 = arith.constant 0 : i32
    return %arg0, %arg2 : i32, i32
  }
  func.func @transform_1(%arg0: i32, %arg1: i32, %arg2: i32) -> (i32, i32) {
    %c0_i32 = arith.constant 0 : i32
    return %arg2, %arg1 : i32, i32
  }
  func.func @transform_2(%arg0: i32, %arg1: i32, %arg2: i32) -> (i32, i32) {
    %c0_i32 = arith.constant 0 : i32
    %c0_i32_0 = arith.constant 0 : i32
    return %c0_i32, %arg1 : i32, i32
  }
  func.func @transform_3(%arg0: i32, %arg1: i32, %arg2: i32) -> (i32, i32) {
    %c0_i32 = arith.constant 0 : i32
    return %arg0, %arg1 : i32, i32
  }
}

module attributes {stable_mosaic.version = 11 : i64} {
  func.func @_pointwise_kernel(%arg0: i32, %arg1: i32, %arg2: i32, %arg3: memref<128x128xbf16, #tpu.memory_space<vmem>>, %arg4: memref<128x128xbf16, #tpu.memory_space<vmem>>, %arg5: memref<1x128xf32, #tpu.memory_space<vmem>>, %arg6: memref<128x128xbf16, #tpu.memory_space<vmem>>, %arg7: memref<128x128xf32, #tpu.memory_space<vmem>>) attributes {dimension_semantics = [#tpu.dimension_semantics<parallel>, #tpu.dimension_semantics<parallel>, #tpu.dimension_semantics<arbitrary>], iteration_bounds = array<i64: 1, 1, 1>, scalar_prefetch = 0 : i64, scratch_operands = 1 : i64, tpu.core_type = #tpu.core_type<tc>, window_params = [{transform_indices = @transform_0, window_bounds = array<i64: 128, 128>}, {transform_indices = @transform_1, window_bounds = array<i64: 128, 128>}, {transform_indices = @transform_2, window_bounds = array<i64: 1, 128>}, {transform_indices = @transform_3, window_bounds = array<i64: 128, 128>}]} {
    %c0_i32 = arith.constant 0 : i32
    %0 = arith.cmpi eq, %arg2, %c0_i32 : i32
    %1 = arith.extui %0 : i1 to i32
    %c0_i32_0 = arith.constant 0 : i32
    %2 = arith.cmpi ne, %1, %c0_i32_0 : i32
    scf.if %2 {
      %cst_10 = arith.constant 0.000000e+00 : f32
      %12 = vector.broadcast %cst_10 : f32 to vector<128x128xf32>
      %c0_11 = arith.constant 0 : index
      %c0_12 = arith.constant 0 : index
      %13 = vector.load %arg7[%c0_11, %c0_12] : memref<128x128xf32, #tpu.memory_space<vmem>>, vector<128x128xf32>
      tpu.vector_store %arg7[%c0_11, %c0_12], %12 {strides = array<i32>} : memref<128x128xf32, #tpu.memory_space<vmem>>, vector<128x128xf32>,
    } else {
    }
    %c0 = arith.constant 0 : index
    %c0_1 = arith.constant 0 : index
    %3 = vector.load %arg7[%c0, %c0_1] : memref<128x128xf32, #tpu.memory_space<vmem>>, vector<128x128xf32>
    %c0_2 = arith.constant 0 : index
    %c0_3 = arith.constant 0 : index
    %4 = vector.load %arg3[%c0_2, %c0_3] : memref<128x128xbf16, #tpu.memory_space<vmem>>, vector<128x128xbf16>
    %c0_4 = arith.constant 0 : index
    %c0_5 = arith.constant 0 : index
    %5 = vector.load %arg4[%c0_4, %c0_5] : memref<128x128xbf16, #tpu.memory_space<vmem>>, vector<128x128xbf16>
    %cst = arith.constant dense<0.000000e+00> : vector<128x128xf32>
    %6 = tpu.matmul %4, %5, %cst {dimension_numbers = #tpu.dot_dimension_numbers<[1], [0], [0], [1], [0, 0, 1, 1], [], []>} : vector<128x128xbf16>, vector<128x128xbf16>, vector<128x128xf32> -> vector<128x128xf32>
    %7 = arith.addf %3, %6 : vector<128x128xf32>
    %c0_6 = arith.constant 0 : index
    %c0_7 = arith.constant 0 : index
    %8 = vector.load %arg7[%c0_6, %c0_7] : memref<128x128xf32, #tpu.memory_space<vmem>>, vector<128x128xf32>
    tpu.vector_store %arg7[%c0_6, %c0_7], %7 {strides = array<i32>} : memref<128x128xf32, #tpu.memory_space<vmem>>, vector<128x128xf32>,
    %c0_i32_8 = arith.constant 0 : i32
    %9 = arith.cmpi eq, %arg2, %c0_i32_8 : i32
    %10 = arith.extui %9 : i1 to i32
    %c0_i32_9 = arith.constant 0 : i32
    %11 = arith.cmpi ne, %10, %c0_i32_9 : i32
    scf.if %11 {
      %c0_10 = arith.constant 0 : index
      %c0_11 = arith.constant 0 : index
      %12 = vector.load %arg7[%c0_10, %c0_11] : memref<128x128xf32, #tpu.memory_space<vmem>>, vector<128x128xf32>
      %c0_12 = arith.constant 0 : index
      %c0_13 = arith.constant 0 : index
      %13 = vector.load %arg5[%c0_12, %c0_13] : memref<1x128xf32, #tpu.memory_space<vmem>>, vector<1x128xf32>
      %14 = vector.broadcast %13 : vector<1x128xf32> to vector<128x128xf32>
      %15 = arith.addf %12, %14 : vector<128x128xf32>
      %cst_14 = arith.constant 0.000000e+00 : f32
      %16 = vector.broadcast %cst_14 : f32 to vector<128x128xf32>
      %17 = arith.maximumf %15, %16 : vector<128x128xf32>
      %18 = arith.truncf %17 : vector<128x128xf32> to vector<128x128xbf16>
      %c0_15 = arith.constant 0 : index
      %c0_16 = arith.constant 0 : index
      %19 = vector.load %arg6[%c0_15, %c0_16] : memref<128x128xbf16, #tpu.memory_space<vmem>>, vector<128x128xbf16>
      tpu.vector_store %arg6[%c0_15, %c0_16], %18 {strides = array<i32>} : memref<128x128xbf16, #tpu.memory_space<vmem>>, vector<128x128xbf16>,
    } else {
    }
    return
  }
  func.func @transform_0(%arg0: i32, %arg1: i32, %arg2: i32) -> (i32, i32) {
    %c0_i32 = arith.constant 0 : i32
    return %arg0, %arg2 : i32, i32
  }
  func.func @transform_1(%arg0: i32, %arg1: i32, %arg2: i32) -> (i32, i32) {
    %c0_i32 = arith.constant 0 : i32
    return %arg2, %arg1 : i32, i32
  }
  func.func @transform_2(%arg0: i32, %arg1: i32, %arg2: i32) -> (i32, i32) {
    %c0_i32 = arith.constant 0 : i32
    %c0_i32_0 = arith.constant 0 : i32
    return %c0_i32, %arg1 : i32, i32
  }
  func.func @transform_3(%arg0: i32, %arg1: i32, %arg2: i32) -> (i32, i32) {
    %c0_i32 = arith.constant 0 : i32
    return %arg0, %arg1 : i32, i32
  }
}

module attributes {stable_mosaic.version = 11 : i64} {
  func.func @_conv3x3_kernel(%arg0: i32, %arg1: i32, %arg2: memref<1x1x10x10x128xbf16, #tpu.memory_space<vmem>>, %arg3: memref<9x128x128xbf16, #tpu.memory_space<vmem>>, %arg4: memref<1x128xf32, #tpu.memory_space<vmem>>, %arg5: memref<1x64x128xbf16, #tpu.memory_space<vmem>>) attributes {dimension_semantics = [#tpu.dimension_semantics<parallel>, #tpu.dimension_semantics<parallel>], iteration_bounds = array<i64: 2, 1>, scalar_prefetch = 0 : i64, scratch_operands = 0 : i64, tpu.core_type = #tpu.core_type<tc>, window_params = [{transform_indices = @transform_0, window_bounds = array<i64: 1, 1, 10, 10, 128>}, {transform_indices = @transform_1, window_bounds = array<i64: 9, 128, 128>}, {transform_indices = @transform_2, window_bounds = array<i64: 1, 128>}, {transform_indices = @transform_3, window_bounds = array<i64: 1, 64, 128>}]} {
    %c0 = arith.constant 0 : index
    %c0_0 = arith.constant 0 : index
    %c0_1 = arith.constant 0 : index
    %c0_2 = arith.constant 0 : index
    %c0_3 = arith.constant 0 : index
    %0 = vector.load %arg2[%c0, %c0_0, %c0_1, %c0_2, %c0_3] : memref<1x1x10x10x128xbf16, #tpu.memory_space<vmem>>, vector<1x1x10x10x128xbf16>
    %1 = vector.shape_cast %0 : vector<1x1x10x10x128xbf16> to vector<10x10x128xbf16>
    %2 = arith.extf %1 : vector<10x10x128xbf16> to vector<10x10x128xf32>
    %cst = arith.constant 0.000000e+00 : f32
    %3 = vector.broadcast %cst : f32 to vector<64x128xf32>
    %4 = vector.extract_strided_slice %2 {offsets = [0, 0, 0], sizes = [8, 8, 128], strides = [1, 1, 1]} : vector<10x10x128xf32> to vector<8x8x128xf32>
    %5 = vector.shape_cast %4 : vector<8x8x128xf32> to vector<64x128xf32>
    %6 = arith.truncf %5 : vector<64x128xf32> to vector<64x128xbf16>
    %c0_4 = arith.constant 0 : index
    %c0_5 = arith.constant 0 : index
    %c0_6 = arith.constant 0 : index
    %7 = vector.load %arg3[%c0_4, %c0_5, %c0_6] : memref<9x128x128xbf16, #tpu.memory_space<vmem>>, vector<1x128x128xbf16>
    %8 = vector.shape_cast %7 : vector<1x128x128xbf16> to vector<128x128xbf16>
    %cst_7 = arith.constant dense<0.000000e+00> : vector<64x128xf32>
    %9 = tpu.matmul %6, %8, %cst_7 {dimension_numbers = #tpu.dot_dimension_numbers<[1], [0], [0], [1], [0, 0, 1, 1], [], []>} : vector<64x128xbf16>, vector<128x128xbf16>, vector<64x128xf32> -> vector<64x128xf32>
    %10 = arith.addf %3, %9 : vector<64x128xf32>
    %11 = vector.extract_strided_slice %2 {offsets = [0, 1, 0], sizes = [8, 8, 128], strides = [1, 1, 1]} : vector<10x10x128xf32> to vector<8x8x128xf32>
    %12 = vector.shape_cast %11 : vector<8x8x128xf32> to vector<64x128xf32>
    %13 = arith.truncf %12 : vector<64x128xf32> to vector<64x128xbf16>
    %c1 = arith.constant 1 : index
    %c0_8 = arith.constant 0 : index
    %c0_9 = arith.constant 0 : index
    %14 = vector.load %arg3[%c1, %c0_8, %c0_9] : memref<9x128x128xbf16, #tpu.memory_space<vmem>>, vector<1x128x128xbf16>
    %15 = vector.shape_cast %14 : vector<1x128x128xbf16> to vector<128x128xbf16>
    %cst_10 = arith.constant dense<0.000000e+00> : vector<64x128xf32>
    %16 = tpu.matmul %13, %15, %cst_10 {dimension_numbers = #tpu.dot_dimension_numbers<[1], [0], [0], [1], [0, 0, 1, 1], [], []>} : vector<64x128xbf16>, vector<128x128xbf16>, vector<64x128xf32> -> vector<64x128xf32>
    %17 = arith.addf %10, %16 : vector<64x128xf32>
    %18 = vector.extract_strided_slice %2 {offsets = [0, 2, 0], sizes = [8, 8, 128], strides = [1, 1, 1]} : vector<10x10x128xf32> to vector<8x8x128xf32>
    %19 = vector.shape_cast %18 : vector<8x8x128xf32> to vector<64x128xf32>
    %20 = arith.truncf %19 : vector<64x128xf32> to vector<64x128xbf16>
    %c2 = arith.constant 2 : index
    %c0_11 = arith.constant 0 : index
    %c0_12 = arith.constant 0 : index
    %21 = vector.load %arg3[%c2, %c0_11, %c0_12] : memref<9x128x128xbf16, #tpu.memory_space<vmem>>, vector<1x128x128xbf16>
    %22 = vector.shape_cast %21 : vector<1x128x128xbf16> to vector<128x128xbf16>
    %cst_13 = arith.constant dense<0.000000e+00> : vector<64x128xf32>
    %23 = tpu.matmul %20, %22, %cst_13 {dimension_numbers = #tpu.dot_dimension_numbers<[1], [0], [0], [1], [0, 0, 1, 1], [], []>} : vector<64x128xbf16>, vector<128x128xbf16>, vector<64x128xf32> -> vector<64x128xf32>
    %24 = arith.addf %17, %23 : vector<64x128xf32>
    %25 = vector.extract_strided_slice %2 {offsets = [1, 0, 0], sizes = [8, 8, 128], strides = [1, 1, 1]} : vector<10x10x128xf32> to vector<8x8x128xf32>
    %26 = vector.shape_cast %25 : vector<8x8x128xf32> to vector<64x128xf32>
    %27 = arith.truncf %26 : vector<64x128xf32> to vector<64x128xbf16>
    %c3 = arith.constant 3 : index
    %c0_14 = arith.constant 0 : index
    %c0_15 = arith.constant 0 : index
    %28 = vector.load %arg3[%c3, %c0_14, %c0_15] : memref<9x128x128xbf16, #tpu.memory_space<vmem>>, vector<1x128x128xbf16>
    %29 = vector.shape_cast %28 : vector<1x128x128xbf16> to vector<128x128xbf16>
    %cst_16 = arith.constant dense<0.000000e+00> : vector<64x128xf32>
    %30 = tpu.matmul %27, %29, %cst_16 {dimension_numbers = #tpu.dot_dimension_numbers<[1], [0], [0], [1], [0, 0, 1, 1], [], []>} : vector<64x128xbf16>, vector<128x128xbf16>, vector<64x128xf32> -> vector<64x128xf32>
    %31 = arith.addf %24, %30 : vector<64x128xf32>
    %32 = vector.extract_strided_slice %2 {offsets = [1, 1, 0], sizes = [8, 8, 128], strides = [1, 1, 1]} : vector<10x10x128xf32> to vector<8x8x128xf32>
    %33 = vector.shape_cast %32 : vector<8x8x128xf32> to vector<64x128xf32>
    %34 = arith.truncf %33 : vector<64x128xf32> to vector<64x128xbf16>
    %c4 = arith.constant 4 : index
    %c0_17 = arith.constant 0 : index
    %c0_18 = arith.constant 0 : index
    %35 = vector.load %arg3[%c4, %c0_17, %c0_18] : memref<9x128x128xbf16, #tpu.memory_space<vmem>>, vector<1x128x128xbf16>
    %36 = vector.shape_cast %35 : vector<1x128x128xbf16> to vector<128x128xbf16>
    %cst_19 = arith.constant dense<0.000000e+00> : vector<64x128xf32>
    %37 = tpu.matmul %34, %36, %cst_19 {dimension_numbers = #tpu.dot_dimension_numbers<[1], [0], [0], [1], [0, 0, 1, 1], [], []>} : vector<64x128xbf16>, vector<128x128xbf16>, vector<64x128xf32> -> vector<64x128xf32>
    %38 = arith.addf %31, %37 : vector<64x128xf32>
    %39 = vector.extract_strided_slice %2 {offsets = [1, 2, 0], sizes = [8, 8, 128], strides = [1, 1, 1]} : vector<10x10x128xf32> to vector<8x8x128xf32>
    %40 = vector.shape_cast %39 : vector<8x8x128xf32> to vector<64x128xf32>
    %41 = arith.truncf %40 : vector<64x128xf32> to vector<64x128xbf16>
    %c5 = arith.constant 5 : index
    %c0_20 = arith.constant 0 : index
    %c0_21 = arith.constant 0 : index
    %42 = vector.load %arg3[%c5, %c0_20, %c0_21] : memref<9x128x128xbf16, #tpu.memory_space<vmem>>, vector<1x128x128xbf16>
    %43 = vector.shape_cast %42 : vector<1x128x128xbf16> to vector<128x128xbf16>
    %cst_22 = arith.constant dense<0.000000e+00> : vector<64x128xf32>
    %44 = tpu.matmul %41, %43, %cst_22 {dimension_numbers = #tpu.dot_dimension_numbers<[1], [0], [0], [1], [0, 0, 1, 1], [], []>} : vector<64x128xbf16>, vector<128x128xbf16>, vector<64x128xf32> -> vector<64x128xf32>
    %45 = arith.addf %38, %44 : vector<64x128xf32>
    %46 = vector.extract_strided_slice %2 {offsets = [2, 0, 0], sizes = [8, 8, 128], strides = [1, 1, 1]} : vector<10x10x128xf32> to vector<8x8x128xf32>
    %47 = vector.shape_cast %46 : vector<8x8x128xf32> to vector<64x128xf32>
    %48 = arith.truncf %47 : vector<64x128xf32> to vector<64x128xbf16>
    %c6 = arith.constant 6 : index
    %c0_23 = arith.constant 0 : index
    %c0_24 = arith.constant 0 : index
    %49 = vector.load %arg3[%c6, %c0_23, %c0_24] : memref<9x128x128xbf16, #tpu.memory_space<vmem>>, vector<1x128x128xbf16>
    %50 = vector.shape_cast %49 : vector<1x128x128xbf16> to vector<128x128xbf16>
    %cst_25 = arith.constant dense<0.000000e+00> : vector<64x128xf32>
    %51 = tpu.matmul %48, %50, %cst_25 {dimension_numbers = #tpu.dot_dimension_numbers<[1], [0], [0], [1], [0, 0, 1, 1], [], []>} : vector<64x128xbf16>, vector<128x128xbf16>, vector<64x128xf32> -> vector<64x128xf32>
    %52 = arith.addf %45, %51 : vector<64x128xf32>
    %53 = vector.extract_strided_slice %2 {offsets = [2, 1, 0], sizes = [8, 8, 128], strides = [1, 1, 1]} : vector<10x10x128xf32> to vector<8x8x128xf32>
    %54 = vector.shape_cast %53 : vector<8x8x128xf32> to vector<64x128xf32>
    %55 = arith.truncf %54 : vector<64x128xf32> to vector<64x128xbf16>
    %c7 = arith.constant 7 : index
    %c0_26 = arith.constant 0 : index
    %c0_27 = arith.constant 0 : index
    %56 = vector.load %arg3[%c7, %c0_26, %c0_27] : memref<9x128x128xbf16, #tpu.memory_space<vmem>>, vector<1x128x128xbf16>
    %57 = vector.shape_cast %56 : vector<1x128x128xbf16> to vector<128x128xbf16>
    %cst_28 = arith.constant dense<0.000000e+00> : vector<64x128xf32>
    %58 = tpu.matmul %55, %57, %cst_28 {dimension_numbers = #tpu.dot_dimension_numbers<[1], [0], [0], [1], [0, 0, 1, 1], [], []>} : vector<64x128xbf16>, vector<128x128xbf16>, vector<64x128xf32> -> vector<64x128xf32>
    %59 = arith.addf %52, %58 : vector<64x128xf32>
    %60 = vector.extract_strided_slice %2 {offsets = [2, 2, 0], sizes = [8, 8, 128], strides = [1, 1, 1]} : vector<10x10x128xf32> to vector<8x8x128xf32>
    %61 = vector.shape_cast %60 : vector<8x8x128xf32> to vector<64x128xf32>
    %62 = arith.truncf %61 : vector<64x128xf32> to vector<64x128xbf16>
    %c8 = arith.constant 8 : index
    %c0_29 = arith.constant 0 : index
    %c0_30 = arith.constant 0 : index
    %63 = vector.load %arg3[%c8, %c0_29, %c0_30] : memref<9x128x128xbf16, #tpu.memory_space<vmem>>, vector<1x128x128xbf16>
    %64 = vector.shape_cast %63 : vector<1x128x128xbf16> to vector<128x128xbf16>
    %cst_31 = arith.constant dense<0.000000e+00> : vector<64x128xf32>
    %65 = tpu.matmul %62, %64, %cst_31 {dimension_numbers = #tpu.dot_dimension_numbers<[1], [0], [0], [1], [0, 0, 1, 1], [], []>} : vector<64x128xbf16>, vector<128x128xbf16>, vector<64x128xf32> -> vector<64x128xf32>
    %66 = arith.addf %59, %65 : vector<64x128xf32>
    %c0_32 = arith.constant 0 : index
    %c0_33 = arith.constant 0 : index
    %67 = vector.load %arg4[%c0_32, %c0_33] : memref<1x128xf32, #tpu.memory_space<vmem>>, vector<1x128xf32>
    %68 = vector.broadcast %67 : vector<1x128xf32> to vector<64x128xf32>
    %69 = arith.addf %66, %68 : vector<64x128xf32>
    %cst_34 = arith.constant 0.000000e+00 : f32
    %70 = vector.broadcast %cst_34 : f32 to vector<64x128xf32>
    %71 = arith.maximumf %69, %70 : vector<64x128xf32>
    %72 = arith.truncf %71 : vector<64x128xf32> to vector<64x128xbf16>
    %c0_35 = arith.constant 0 : index
    %c0_36 = arith.constant 0 : index
    %c0_37 = arith.constant 0 : index
    %73 = vector.load %arg5[%c0_35, %c0_36, %c0_37] : memref<1x64x128xbf16, #tpu.memory_space<vmem>>, vector<1x64x128xbf16>
    %74 = vector.shape_cast %73 : vector<1x64x128xbf16> to vector<64x128xbf16>
    %75 = vector.shape_cast %72 : vector<64x128xbf16> to vector<1x64x128xbf16>
    tpu.vector_store %arg5[%c0_35, %c0_36, %c0_37], %75 {strides = array<i32>} : memref<1x64x128xbf16, #tpu.memory_space<vmem>>, vector<1x64x128xbf16>,
    return
  }
  func.func @transform_0(%arg0: i32, %arg1: i32) -> (i32, i32, i32, i32, i32) {
    %c0_i32 = arith.constant 0 : i32
    %c0_i32_0 = arith.constant 0 : i32
    %c0_i32_1 = arith.constant 0 : i32
    %c0_i32_2 = arith.constant 0 : i32
    %c0_i32_3 = arith.constant 0 : i32
    return %c0_i32, %arg0, %c0_i32_0, %c0_i32_1, %c0_i32_2 : i32, i32, i32, i32, i32
  }
  func.func @transform_1(%arg0: i32, %arg1: i32) -> (i32, i32, i32) {
    %c0_i32 = arith.constant 0 : i32
    %c0_i32_0 = arith.constant 0 : i32
    %c0_i32_1 = arith.constant 0 : i32
    return %c0_i32, %c0_i32_0, %arg1 : i32, i32, i32
  }
  func.func @transform_2(%arg0: i32, %arg1: i32) -> (i32, i32) {
    %c0_i32 = arith.constant 0 : i32
    %c0_i32_0 = arith.constant 0 : i32
    return %c0_i32, %arg1 : i32, i32
  }
  func.func @transform_3(%arg0: i32, %arg1: i32) -> (i32, i32, i32) {
    %c0_i32 = arith.constant 0 : i32
    %c0_i32_0 = arith.constant 0 : i32
    return %arg0, %c0_i32, %arg1 : i32, i32, i32
  }
}

module attributes {stable_mosaic.version = 11 : i64} {
  func.func @_pointwise_kernel(%arg0: i32, %arg1: i32, %arg2: i32, %arg3: memref<128x128xbf16, #tpu.memory_space<vmem>>, %arg4: memref<128x128xbf16, #tpu.memory_space<vmem>>, %arg5: memref<1x128xf32, #tpu.memory_space<vmem>>, %arg6: memref<128x128xbf16, #tpu.memory_space<vmem>>, %arg7: memref<128x128xf32, #tpu.memory_space<vmem>>, %arg8: memref<128x128xf32, #tpu.memory_space<vmem>>) attributes {dimension_semantics = [#tpu.dimension_semantics<parallel>, #tpu.dimension_semantics<parallel>, #tpu.dimension_semantics<arbitrary>], iteration_bounds = array<i64: 1, 1, 1>, scalar_prefetch = 0 : i64, scratch_operands = 1 : i64, tpu.core_type = #tpu.core_type<tc>, window_params = [{transform_indices = @transform_0, window_bounds = array<i64: 128, 128>}, {transform_indices = @transform_1, window_bounds = array<i64: 128, 128>}, {transform_indices = @transform_2, window_bounds = array<i64: 1, 128>}, {transform_indices = @transform_3, window_bounds = array<i64: 128, 128>}, {transform_indices = @transform_4, window_bounds = array<i64: 128, 128>}]} {
    %c0_i32 = arith.constant 0 : i32
    %0 = arith.cmpi eq, %arg2, %c0_i32 : i32
    %1 = arith.extui %0 : i1 to i32
    %c0_i32_0 = arith.constant 0 : i32
    %2 = arith.cmpi ne, %1, %c0_i32_0 : i32
    scf.if %2 {
      %cst_10 = arith.constant 0.000000e+00 : f32
      %12 = vector.broadcast %cst_10 : f32 to vector<128x128xf32>
      %c0_11 = arith.constant 0 : index
      %c0_12 = arith.constant 0 : index
      %13 = vector.load %arg8[%c0_11, %c0_12] : memref<128x128xf32, #tpu.memory_space<vmem>>, vector<128x128xf32>
      tpu.vector_store %arg8[%c0_11, %c0_12], %12 {strides = array<i32>} : memref<128x128xf32, #tpu.memory_space<vmem>>, vector<128x128xf32>,
    } else {
    }
    %c0 = arith.constant 0 : index
    %c0_1 = arith.constant 0 : index
    %3 = vector.load %arg8[%c0, %c0_1] : memref<128x128xf32, #tpu.memory_space<vmem>>, vector<128x128xf32>
    %c0_2 = arith.constant 0 : index
    %c0_3 = arith.constant 0 : index
    %4 = vector.load %arg3[%c0_2, %c0_3] : memref<128x128xbf16, #tpu.memory_space<vmem>>, vector<128x128xbf16>
    %c0_4 = arith.constant 0 : index
    %c0_5 = arith.constant 0 : index
    %5 = vector.load %arg4[%c0_4, %c0_5] : memref<128x128xbf16, #tpu.memory_space<vmem>>, vector<128x128xbf16>
    %cst = arith.constant dense<0.000000e+00> : vector<128x128xf32>
    %6 = tpu.matmul %4, %5, %cst {dimension_numbers = #tpu.dot_dimension_numbers<[1], [0], [0], [1], [0, 0, 1, 1], [], []>} : vector<128x128xbf16>, vector<128x128xbf16>, vector<128x128xf32> -> vector<128x128xf32>
    %7 = arith.addf %3, %6 : vector<128x128xf32>
    %c0_6 = arith.constant 0 : index
    %c0_7 = arith.constant 0 : index
    %8 = vector.load %arg8[%c0_6, %c0_7] : memref<128x128xf32, #tpu.memory_space<vmem>>, vector<128x128xf32>
    tpu.vector_store %arg8[%c0_6, %c0_7], %7 {strides = array<i32>} : memref<128x128xf32, #tpu.memory_space<vmem>>, vector<128x128xf32>,
    %c0_i32_8 = arith.constant 0 : i32
    %9 = arith.cmpi eq, %arg2, %c0_i32_8 : i32
    %10 = arith.extui %9 : i1 to i32
    %c0_i32_9 = arith.constant 0 : i32
    %11 = arith.cmpi ne, %10, %c0_i32_9 : i32
    scf.if %11 {
      %c0_10 = arith.constant 0 : index
      %c0_11 = arith.constant 0 : index
      %12 = vector.load %arg8[%c0_10, %c0_11] : memref<128x128xf32, #tpu.memory_space<vmem>>, vector<128x128xf32>
      %c0_12 = arith.constant 0 : index
      %c0_13 = arith.constant 0 : index
      %13 = vector.load %arg5[%c0_12, %c0_13] : memref<1x128xf32, #tpu.memory_space<vmem>>, vector<1x128xf32>
      %14 = vector.broadcast %13 : vector<1x128xf32> to vector<128x128xf32>
      %15 = arith.addf %12, %14 : vector<128x128xf32>
      %cst_14 = arith.constant 0.000000e+00 : f32
      %16 = vector.broadcast %cst_14 : f32 to vector<128x128xf32>
      %17 = arith.maximumf %15, %16 : vector<128x128xf32>
      %c0_15 = arith.constant 0 : index
      %c0_16 = arith.constant 0 : index
      %18 = vector.load %arg6[%c0_15, %c0_16] : memref<128x128xbf16, #tpu.memory_space<vmem>>, vector<128x128xbf16>
      %19 = arith.extf %18 : vector<128x128xbf16> to vector<128x128xf32>
      %20 = arith.addf %17, %19 : vector<128x128xf32>
      %c0_17 = arith.constant 0 : index
      %c0_18 = arith.constant 0 : index
      %21 = vector.load %arg7[%c0_17, %c0_18] : memref<128x128xf32, #tpu.memory_space<vmem>>, vector<128x128xf32>
      tpu.vector_store %arg7[%c0_17, %c0_18], %20 {strides = array<i32>} : memref<128x128xf32, #tpu.memory_space<vmem>>, vector<128x128xf32>,
    } else {
    }
    return
  }
  func.func @transform_0(%arg0: i32, %arg1: i32, %arg2: i32) -> (i32, i32) {
    %c0_i32 = arith.constant 0 : i32
    return %arg0, %arg2 : i32, i32
  }
  func.func @transform_1(%arg0: i32, %arg1: i32, %arg2: i32) -> (i32, i32) {
    %c0_i32 = arith.constant 0 : i32
    return %arg2, %arg1 : i32, i32
  }
  func.func @transform_2(%arg0: i32, %arg1: i32, %arg2: i32) -> (i32, i32) {
    %c0_i32 = arith.constant 0 : i32
    %c0_i32_0 = arith.constant 0 : i32
    return %c0_i32, %arg1 : i32, i32
  }
  func.func @transform_3(%arg0: i32, %arg1: i32, %arg2: i32) -> (i32, i32) {
    %c0_i32 = arith.constant 0 : i32
    return %arg0, %arg1 : i32, i32
  }
  func.func @transform_4(%arg0: i32, %arg1: i32, %arg2: i32) -> (i32, i32) {
    %c0_i32 = arith.constant 0 : i32
    return %arg0, %arg1 : i32, i32
  }
}

</mosaic_0001>

<bundles_post_ra>
// kernel: bottleneck_forward.6
= control target key start
LH: loop header
LB: loop body
LE: loop exit
PB: predicated region body
PF: predicated region fallthrough
CT: control target
= control target key end

     0   :  { %s721_s1 = inlined_call_operand.vmem [shape: bf16[128,128], index: 1, kind: input, shape index: {}]   ;;  %s722_s0 = inlined_call_operand.vmem [shape: bf16[128,128], index: 0, kind: input, shape index: {}]   ;;  %s723_s2 = inlined_call_operand.vmem [shape: f32[1,128], index: 2, kind: input, shape index: {}]   ;;  %s724_s3 = inlined_call_operand.vmem [shape: bf16[128,128], index: 3, kind: output, shape index: {}]  }
   0x1   :  { %v610_v0 = vld [vmem:[%s721_s1 + $0x38] sm:$0xff]   ;;  %v611_v1 = vld [vmem:[%s721_s1 + $0x30] sm:$0xff]   ;;  %v612_v2 = vld [vmem:[%s721_s1 + $0x28] sm:$0xff]  }
   0x2   :  { %562 = vmatprep.subr.bf16.mxu0 %v610_v0  ;;  %594 = vmatprep.subr.bf16.mxu1 %v610_v0  ;;  %v613_v3 = vld [vmem:[%s721_s1 + $0x20] sm:$0xff]   ;;  %v614_v6 = vld [vmem:[%s721_s1 + $0x18] sm:$0xff]   ;;  %v615_v7 = vld [vmem:[%s721_s1 + $0x10] sm:$0xff]  }
   0x3   :  { %563 = vmatpush3.bf16.msra.mxu0 %v610_v0  ;;  %602 = vmatpush3.bf16.msra.mxu1 %v610_v0  ;;  %v618_v4 = vld [vmem:[%s722_s0] sm:$0xff]   ;;  %v616_v8 = vld [vmem:[%s721_s1 + $0x8] sm:$0xff]   ;;  %v622_v12 = vld [vmem:[%s722_s0 + $0x10] sm:$0xff]  }
   0x4   :  { %564 = vmatprep.subr.bf16.mxu0 %v611_v1  ;;  %595 = vmatprep.subr.bf16.mxu1 %v611_v1  ;;  %v619_v5 = vld [vmem:[%s722_s0 + $0x20] sm:$0xff]   ;;  %v620_v10 = vld [vmem:[%s722_s0 + $0x8] sm:$0xff]   ;;  %v623_v13 = vld [vmem:[%s722_s0 + $0x30] sm:$0xff]  }
   0x5   :  { %578 = vmatprep.mubr.bf16.mxu0 %v618_v4  ;;  %586 = vmatprep.mubr.bf16.mxu1 %v619_v5  ;;  %v617_v9 = vld [vmem:[%s721_s1] sm:$0xff]   ;;  %v621_v11 = vld [vmem:[%s722_s0 + $0x28] sm:$0xff]   ;;  %v624_v14 = vld [vmem:[%s722_s0 + $0x18] sm:$0xff]  }
   0x6   :  { %v625_v15 = vld [vmem:[%s722_s0 + $0x38] sm:$0xff]   ;;  %v466_v16 = vld [vmem:[%s723_s2] ss:$0 sm:$0xff] }
   0x7   :  { %565 = vmatpush3.bf16.msra.mxu0 %v611_v1  ;;  %603 = vmatpush3.bf16.msra.mxu1 %v611_v1 }
   0x8   :  { %566 = vmatprep.subr.bf16.mxu0 %v612_v2  ;;  %596 = vmatprep.subr.bf16.mxu1 %v612_v2 }
   0xb   :  { %567 = vmatpush3.bf16.msra.mxu0 %v612_v2  ;;  %604 = vmatpush3.bf16.msra.mxu1 %v612_v2 }
   0xc   :  { %568 = vmatprep.subr.bf16.mxu0 %v613_v3  ;;  %597 = vmatprep.subr.bf16.mxu1 %v613_v3 }
   0xf   :  { %569 = vmatpush3.bf16.msra.mxu0 %v613_v3  ;;  %605 = vmatpush3.bf16.msra.mxu1 %v613_v3 }
  0x10   :  { %570 = vmatprep.subr.bf16.mxu0 %v614_v6  ;;  %598 = vmatprep.subr.bf16.mxu1 %v614_v6 }
  0x13   :  { %571 = vmatpush3.bf16.msra.mxu0 %v614_v6  ;;  %606 = vmatpush3.bf16.msra.mxu1 %v614_v6 }
  0x14   :  { %572 = vmatprep.subr.bf16.mxu0 %v615_v7  ;;  %599 = vmatprep.subr.bf16.mxu1 %v615_v7 }
  0x17   :  { %573 = vmatpush3.bf16.msra.mxu0 %v615_v7  ;;  %607 = vmatpush3.bf16.msra.mxu1 %v615_v7 }
  0x18   :  { %574 = vmatprep.subr.bf16.mxu0 %v616_v8  ;;  %600 = vmatprep.subr.bf16.mxu1 %v616_v8 }
  0x1b   :  { %575 = vmatpush3.bf16.msra.mxu0 %v616_v8  ;;  %608 = vmatpush3.bf16.msra.mxu1 %v616_v8 }
  0x1c   :  { %576 = vmatprep.subr.bf16.mxu0 %v617_v9  ;;  %601 = vmatprep.subr.bf16.mxu1 %v617_v9 }
  0x1f   :  { %577 = vmatpush3.bf16.msra.mxu0 %v617_v9  ;;  %609 = vmatpush3.bf16.msra.mxu1 %v617_v9 }
  0x22   :  { %579 = vmatmul.mubr.bf16.vlgmr.msra.gmra.mxu0 %v620_v10  ;;  %587 = vmatmul.mubr.bf16.vlgmr.msra.gmra.mxu1 %v621_v11 }
  0x23   :  { %582 = vmatprep.mubr.bf16.mxu0 %v622_v12  ;;  %590 = vmatprep.mubr.bf16.mxu1 %v623_v13 }
  0x2a   :  { %583 = vmatmul.mubr.bf16.gmra.mxu0 %v624_v14  ;;  %591 = vmatmul.mubr.bf16.gmra.mxu1 %v625_v15 }
  0xe2   :  { %v580_v17 = vpop.f32.mrf.mxu0  ;;  %v588_v18 = vpop.f32.mrf.mxu1 }
  0xe3   :  { %v336_v19 = vadd.f32 %v580_v17, %v466_v16  ;;  %v344_v20 = vadd.f32 %v588_v18, %v466_v16 }
  0xe4   :  { %v213_v21 = vpop.f32.mrf.mxu0  ;;  %v245_v22 = vpop.f32.mrf.mxu1 }
  0xe5   :  { %v334_v23 = vadd.f32 %v466_v16, %v213_v21  ;;  %v342_v24 = vadd.f32 %v466_v16, %v245_v22  ;;  %v352_v29 = vmax.f32 %v336_v19, 0.0  ;;  %v360_v30 = vmax.f32 %v344_v20, 0.0 }
  0xe6   :  { %v581_v25 = vpop.f32.mrf.mxu0  ;;  %v589_v26 = vpop.f32.mrf.mxu1 }
  0xe7   :  { %v337_v27 = vadd.f32 %v581_v25, %v466_v16  ;;  %v345_v28 = vadd.f32 %v589_v26, %v466_v16  ;;  %v350_v37 = vmax.f32 %v334_v23, 0.0  ;;  %v358_v38 = vmax.f32 %v342_v24, 0.0 }
  0xe8   :  { %v216_v31 = vpop.f32.mrf.mxu0  ;;  %v248_v32 = vpop.f32.mrf.mxu1 }
  0xe9   :  { %v353_v33 = vmax.f32 %v337_v27, 0.0  ;;  %v361_v34 = vmax.f32 %v345_v28, 0.0  ;;  %v335_v35 = vadd.f32 %v466_v16, %v216_v31  ;;  %v343_v36 = vadd.f32 %v466_v16, %v248_v32 }
  0xea   :  { %v584_v39 = vpop.f32.mrf.mxu0  ;;  %v592_v40 = vpop.f32.mrf.mxu1 }
  0xeb   :  { %v507_v41 = vpack.c.bf16 %v353_v33, %v352_v29  ;;  %v527_v42 = vpack.c.bf16 %v361_v34, %v360_v30  ;;  %v351_v43 = vmax.f32 %v335_v35, 0.0  ;;  %v359_v44 = vmax.f32 %v343_v36, 0.0 }
  0xec   :  { %v340_v45 = vadd.f32 %v584_v39, %v466_v16  ;;  %v348_v46 = vadd.f32 %v592_v40, %v466_v16  ;;  %v229_v47 = vpop.f32.mrf.mxu0  ;;  %v261_v48 = vpop.f32.mrf.mxu1 }
  0xed   :  { %539 = vst [vmem:[%s724_s3 + $0x8] sm:$0xff] %v507_v41   ;;  %543 = vst [vmem:[%s724_s3 + $0x28] sm:$0xff] %v527_v42   ;;  %v502_v49 = vpack.c.bf16 %v351_v43, %v350_v37  ;;  %v522_v50 = vpack.c.bf16 %v359_v44, %v358_v38  ;;  %v338_v51 = vadd.f32 %v466_v16, %v229_v47 }
  0xee   :  { %v346_v52 = vadd.f32 %v466_v16, %v261_v48  ;;  %v585_v53 = vpop.f32.mrf.mxu0  ;;  %v593_v54 = vpop.f32.mrf.mxu1  ;;  %v356_v57 = vmax.f32 %v340_v45, 0.0  ;;  %v364_v58 = vmax.f32 %v348_v46, 0.0 }
  0xef   :  { %503 = vst [vmem:[%s724_s3] sm:$0xff] %v502_v49   ;;  %542 = vst [vmem:[%s724_s3 + $0x20] sm:$0xff] %v522_v50   ;;  %v341_v55 = vadd.f32 %v585_v53, %v466_v16  ;;  %v349_v56 = vadd.f32 %v593_v54, %v466_v16  ;;  %v354_v1 = vmax.f32 %v338_v51, 0.0 }
  0xf0   :  { %v232_v59 = vpop.f32.mrf.mxu0  ;;  %v264_v60 = vpop.f32.mrf.mxu1  ;;  %v362_v2 = vmax.f32 %v346_v52, 0.0 }
  0xf1   :  { %v357_v61 = vmax.f32 %v341_v55, 0.0  ;;  %v365_v62 = vmax.f32 %v349_v56, 0.0  ;;  %v339_v63 = vadd.f32 %v466_v16, %v232_v59  ;;  %v347_v0 = vadd.f32 %v466_v16, %v264_v60 }
  0xf3   :  { %v517_v3 = vpack.c.bf16 %v357_v61, %v356_v57  ;;  %v537_v4 = vpack.c.bf16 %v365_v62, %v364_v58  ;;  %v355_v5 = vmax.f32 %v339_v63, 0.0  ;;  %v363_v6 = vmax.f32 %v347_v0, 0.0 }
  0xf5   :  { %541 = vst [vmem:[%s724_s3 + $0x18] sm:$0xff] %v517_v3   ;;  %545 = vst [vmem:[%s724_s3 + $0x38] sm:$0xff] %v537_v4   ;;  %v512_v7 = vpack.c.bf16 %v355_v5, %v354_v1  ;;  %v532_v8 = vpack.c.bf16 %v363_v6, %v362_v2 }
  0xf7   :  { %540 = vst [vmem:[%s724_s3 + $0x10] sm:$0xff] %v512_v7   ;;  %544 = vst [vmem:[%s724_s3 + $0x30] sm:$0xff] %v532_v8  }

// kernel: bottleneck_forward.4
= control target key start
LH: loop header
LB: loop body
LE: loop exit
PB: predicated region body
PF: predicated region fallthrough
CT: control target
= control target key end

     0   :  { %8 = vsyncpa [#allocation4], 0  ;;  %s666_s12 = smov [#allocation3]   ;;  %s743_s0 = inlined_call_operand.vmem [shape: bf16[128,128], index: 0, kind: input, shape index: {}]   ;;  %s744_s1 = inlined_call_operand.hbm [shape: bf16[128,128], index: 1, kind: input, shape index: {}]   ;;  %s745_s2 = inlined_call_operand.vmem [shape: f32[1,128], index: 2, kind: input, shape index: {}]   ;;  %s746_s3 = inlined_call_operand.vmem [shape: bf16[128,128], index: 3, kind: output, shape index: {}]  }
   0x1   :  { %s16_s13 = sshll.u32 %s666_s12, 4  ;;  %s17_s13 = int_to_ptr.vmem [resolvable:$true] %s16_s13 }
   0x2   :  { %s652_s14 = scalar_lea.vmem %s17_s13, 1024  ;;  %p657_p1 = scmp.lt.s32.totalorder %s17_s13, %s17_s13 }
   0x3   :  { %p653_p0 = scmp.ne.s32.totalorder %s17_s13, %s652_s14  ;;  %p658_p2 = scmp.lt.s32.totalorder %s652_s14, %s652_s14 }
   0x5   :  { %p659_p3 = por %p658_p2, %p657_p1 }
   0x7   :  { %p660_p4 = pnand %p659_p3, %p653_p0 }
   0x9   :  { %663 = shalt.err (!%p660_p4)
}
   0xa   :  { %s667_s15 = smov 64   ;;  %s668_s16 = smov 4  }
   0xb   :  { %22 = dma.hbm_to_vmem [thread:$0]  %s744_s1, 1024, %s17_s13, [#allocation4], %s667_s15, %s667_s15, %s668_s16  }
   0xc   :  { %664 = dma.done.wait [#allocation4], 1024  }
   0xd   :  { %665 = vsyncadd [#allocation4], 4294966272  ;;  %v628_v0 = vld [vmem:[#allocation3 + $0x38] sm:$0xff]   ;;  %v629_v1 = vld [vmem:[#allocation3 + $0x30] sm:$0xff]  }
   0xe   :  { %577 = vmatprep.subr.bf16.mxu0 %v628_v0  ;;  %609 = vmatprep.subr.bf16.mxu1 %v628_v0  ;;  %v630_v2 = vld [vmem:[#allocation3 + $0x28] sm:$0xff]   ;;  %v631_v3 = vld [vmem:[#allocation3 + $0x20] sm:$0xff]   ;;  %v632_v6 = vld [vmem:[#allocation3 + $0x18] sm:$0xff]  }
   0xf   :  { %578 = vmatpush3.bf16.msra.mxu0 %v628_v0  ;;  %617 = vmatpush3.bf16.msra.mxu1 %v628_v0  ;;  %v636_v4 = vld [vmem:[%s743_s0] sm:$0xff]   ;;  %v633_v7 = vld [vmem:[#allocation3 + $0x10] sm:$0xff]   ;;  %v634_v8 = vld [vmem:[#allocation3 + $0x8] sm:$0xff]  }
  0x10   :  { %579 = vmatprep.subr.bf16.mxu0 %v629_v1  ;;  %610 = vmatprep.subr.bf16.mxu1 %v629_v1  ;;  %v637_v5 = vld [vmem:[%s743_s0 + $0x20] sm:$0xff]   ;;  %v638_v10 = vld [vmem:[%s743_s0 + $0x8] sm:$0xff]   ;;  %v640_v12 = vld [vmem:[%s743_s0 + $0x10] sm:$0xff]  }
  0x11   :  { %593 = vmatprep.mubr.bf16.mxu0 %v636_v4  ;;  %601 = vmatprep.mubr.bf16.mxu1 %v637_v5  ;;  %v635_v9 = vld [vmem:[#allocation3] sm:$0xff]   ;;  %v639_v11 = vld [vmem:[%s743_s0 + $0x28] sm:$0xff]   ;;  %v641_v13 = vld [vmem:[%s743_s0 + $0x30] sm:$0xff]  }
  0x12   :  { %v642_v14 = vld [vmem:[%s743_s0 + $0x18] sm:$0xff]   ;;  %v481_v16 = vld [vmem:[%s745_s2] ss:$0 sm:$0xff] }
  0x13   :  { %580 = vmatpush3.bf16.msra.mxu0 %v629_v1  ;;  %618 = vmatpush3.bf16.msra.mxu1 %v629_v1  ;;  %v643_v15 = vld [vmem:[%s743_s0 + $0x38] sm:$0xff]  }
  0x14   :  { %581 = vmatprep.subr.bf16.mxu0 %v630_v2  ;;  %611 = vmatprep.subr.bf16.mxu1 %v630_v2 }
  0x17   :  { %582 = vmatpush3.bf16.msra.mxu0 %v630_v2  ;;  %619 = vmatpush3.bf16.msra.mxu1 %v630_v2 }
  0x18   :  { %583 = vmatprep.subr.bf16.mxu0 %v631_v3  ;;  %612 = vmatprep.subr.bf16.mxu1 %v631_v3 }
  0x1b   :  { %584 = vmatpush3.bf16.msra.mxu0 %v631_v3  ;;  %620 = vmatpush3.bf16.msra.mxu1 %v631_v3 }
  0x1c   :  { %585 = vmatprep.subr.bf16.mxu0 %v632_v6  ;;  %613 = vmatprep.subr.bf16.mxu1 %v632_v6 }
  0x1f   :  { %586 = vmatpush3.bf16.msra.mxu0 %v632_v6  ;;  %621 = vmatpush3.bf16.msra.mxu1 %v632_v6 }
  0x20   :  { %587 = vmatprep.subr.bf16.mxu0 %v633_v7  ;;  %614 = vmatprep.subr.bf16.mxu1 %v633_v7 }
  0x23   :  { %588 = vmatpush3.bf16.msra.mxu0 %v633_v7  ;;  %622 = vmatpush3.bf16.msra.mxu1 %v633_v7 }
  0x24   :  { %589 = vmatprep.subr.bf16.mxu0 %v634_v8  ;;  %615 = vmatprep.subr.bf16.mxu1 %v634_v8 }
  0x27   :  { %590 = vmatpush3.bf16.msra.mxu0 %v634_v8  ;;  %623 = vmatpush3.bf16.msra.mxu1 %v634_v8 }
  0x28   :  { %591 = vmatprep.subr.bf16.mxu0 %v635_v9  ;;  %616 = vmatprep.subr.bf16.mxu1 %v635_v9 }
  0x2b   :  { %592 = vmatpush3.bf16.msra.mxu0 %v635_v9  ;;  %624 = vmatpush3.bf16.msra.mxu1 %v635_v9 }
  0x2e   :  { %594 = vmatmul.mubr.bf16.vlgmr.msra.gmra.mxu0 %v638_v10  ;;  %602 = vmatmul.mubr.bf16.vlgmr.msra.gmra.mxu1 %v639_v11 }
  0x2f   :  { %597 = vmatprep.mubr.bf16.mxu0 %v640_v12  ;;  %605 = vmatprep.mubr.bf16.mxu1 %v641_v13 }
  0x36   :  { %598 = vmatmul.mubr.bf16.gmra.mxu0 %v642_v14  ;;  %606 = vmatmul.mubr.bf16.gmra.mxu1 %v643_v15 }
  0xee   :  { %v595_v17 = vpop.f32.mrf.mxu0  ;;  %v603_v18 = vpop.f32.mrf.mxu1 }
  0xef   :  { %v350_v19 = vadd.f32 %v595_v17, %v481_v16  ;;  %v358_v20 = vadd.f32 %v603_v18, %v481_v16 }
  0xf0   :  { %v227_v21 = vpop.f32.mrf.mxu0  ;;  %v259_v22 = vpop.f32.mrf.mxu1 }
  0xf1   :  { %v348_v23 = vadd.f32 %v481_v16, %v227_v21  ;;  %v356_v24 = vadd.f32 %v481_v16, %v259_v22  ;;  %v366_v29 = vmax.f32 %v350_v19, 0.0  ;;  %v374_v30 = vmax.f32 %v358_v20, 0.0 }
  0xf2   :  { %v596_v25 = vpop.f32.mrf.mxu0  ;;  %v604_v26 = vpop.f32.mrf.mxu1 }
  0xf3   :  { %v351_v27 = vadd.f32 %v596_v25, %v481_v16  ;;  %v359_v28 = vadd.f32 %v604_v26, %v481_v16  ;;  %v364_v37 = vmax.f32 %v348_v23, 0.0  ;;  %v372_v38 = vmax.f32 %v356_v24, 0.0 }
  0xf4   :  { %v230_v31 = vpop.f32.mrf.mxu0  ;;  %v262_v32 = vpop.f32.mrf.mxu1 }
  0xf5   :  { %v367_v33 = vmax.f32 %v351_v27, 0.0  ;;  %v375_v34 = vmax.f32 %v359_v28, 0.0  ;;  %v349_v35 = vadd.f32 %v481_v16, %v230_v31  ;;  %v357_v36 = vadd.f32 %v481_v16, %v262_v32 }
  0xf6   :  { %v599_v39 = vpop.f32.mrf.mxu0  ;;  %v607_v40 = vpop.f32.mrf.mxu1 }
  0xf7   :  { %v522_v41 = vpack.c.bf16 %v367_v33, %v366_v29  ;;  %v542_v42 = vpack.c.bf16 %v375_v34, %v374_v30  ;;  %v365_v43 = vmax.f32 %v349_v35, 0.0  ;;  %v373_v44 = vmax.f32 %v357_v36, 0.0 }
  0xf8   :  { %v354_v45 = vadd.f32 %v599_v39, %v481_v16  ;;  %v362_v46 = vadd.f32 %v607_v40, %v481_v16  ;;  %v243_v47 = vpop.f32.mrf.mxu0  ;;  %v275_v48 = vpop.f32.mrf.mxu1 }
  0xf9   :  { %554 = vst [vmem:[%s746_s3 + $0x8] sm:$0xff] %v522_v41   ;;  %558 = vst [vmem:[%s746_s3 + $0x28] sm:$0xff] %v542_v42   ;;  %v517_v49 = vpack.c.bf16 %v365_v43, %v364_v37  ;;  %v537_v50 = vpack.c.bf16 %v373_v44, %v372_v38  ;;  %v352_v51 = vadd.f32 %v481_v16, %v243_v47 }
  0xfa   :  { %v360_v52 = vadd.f32 %v481_v16, %v275_v48  ;;  %v600_v53 = vpop.f32.mrf.mxu0  ;;  %v608_v54 = vpop.f32.mrf.mxu1  ;;  %v370_v57 = vmax.f32 %v354_v45, 0.0  ;;  %v378_v58 = vmax.f32 %v362_v46, 0.0 }
  0xfb   :  { %518 = vst [vmem:[%s746_s3] sm:$0xff] %v517_v49   ;;  %557 = vst [vmem:[%s746_s3 + $0x20] sm:$0xff] %v537_v50   ;;  %v355_v55 = vadd.f32 %v600_v53, %v481_v16  ;;  %v363_v56 = vadd.f32 %v608_v54, %v481_v16  ;;  %v368_v1 = vmax.f32 %v352_v51, 0.0 }
  0xfc   :  { %v246_v59 = vpop.f32.mrf.mxu0  ;;  %v278_v60 = vpop.f32.mrf.mxu1  ;;  %v376_v2 = vmax.f32 %v360_v52, 0.0 }
  0xfd   :  { %v371_v61 = vmax.f32 %v355_v55, 0.0  ;;  %v379_v62 = vmax.f32 %v363_v56, 0.0  ;;  %v353_v63 = vadd.f32 %v481_v16, %v246_v59  ;;  %v361_v0 = vadd.f32 %v481_v16, %v278_v60 }
  0xff   :  { %v532_v3 = vpack.c.bf16 %v371_v61, %v370_v57  ;;  %v552_v4 = vpack.c.bf16 %v379_v62, %v378_v58  ;;  %v369_v5 = vmax.f32 %v353_v63, 0.0  ;;  %v377_v6 = vmax.f32 %v361_v0, 0.0 }
 0x101   :  { %556 = vst [vmem:[%s746_s3 + $0x18] sm:$0xff] %v532_v3   ;;  %560 = vst [vmem:[%s746_s3 + $0x38] sm:$0xff] %v552_v4   ;;  %v527_v7 = vpack.c.bf16 %v369_v5, %v368_v1  ;;  %v547_v8 = vpack.c.bf16 %v377_v6, %v376_v2 }
 0x103   :  { %555 = vst [vmem:[%s746_s3 + $0x10] sm:$0xff] %v527_v7   ;;  %559 = vst [vmem:[%s746_s3 + $0x30] sm:$0xff] %v547_v8  }
 0x104   :  { %464 = vsyncpa [#allocation4], 1 }

// kernel: bottleneck_forward.7
= control target key start
LH: loop header
LB: loop body
LE: loop exit
PB: predicated region body
PF: predicated region fallthrough
CT: control target
= control target key end

     0   :  { %s747_s1 = inlined_call_operand.vmem [shape: bf16[128,128], index: 1, kind: input, shape index: {}]   ;;  %s748_s0 = inlined_call_operand.vmem [shape: bf16[128,128], index: 0, kind: input, shape index: {}]   ;;  %s749_s2 = inlined_call_operand.vmem [shape: f32[1,128], index: 2, kind: input, shape index: {}]   ;;  %s750_s3 = inlined_call_operand.vmem [shape: bf16[128,128], index: 3, kind: input, shape index: {}]   ;;  %s751_s4 = inlined_call_operand.vmem [shape: f32[128,128], index: 4, kind: output, shape index: {}]  }
   0x1   :  { %v557_v0 = vld [vmem:[%s747_s1 + $0x38] sm:$0xff]   ;;  %v558_v1 = vld [vmem:[%s747_s1 + $0x30] sm:$0xff]   ;;  %v559_v2 = vld [vmem:[%s747_s1 + $0x28] sm:$0xff]  }
   0x2   :  { %509 = vmatprep.subr.bf16.mxu0 %v557_v0  ;;  %541 = vmatprep.subr.bf16.mxu1 %v557_v0  ;;  %v560_v3 = vld [vmem:[%s747_s1 + $0x20] sm:$0xff]   ;;  %v561_v6 = vld [vmem:[%s747_s1 + $0x18] sm:$0xff]   ;;  %v562_v7 = vld [vmem:[%s747_s1 + $0x10] sm:$0xff]  }
   0x3   :  { %510 = vmatpush3.bf16.msra.mxu0 %v557_v0  ;;  %549 = vmatpush3.bf16.msra.mxu1 %v557_v0  ;;  %v565_v4 = vld [vmem:[%s748_s0] sm:$0xff]   ;;  %v563_v8 = vld [vmem:[%s747_s1 + $0x8] sm:$0xff]   ;;  %v569_v12 = vld [vmem:[%s748_s0 + $0x10] sm:$0xff]  }
   0x4   :  { %511 = vmatprep.subr.bf16.mxu0 %v558_v1  ;;  %542 = vmatprep.subr.bf16.mxu1 %v558_v1  ;;  %v566_v5 = vld [vmem:[%s748_s0 + $0x20] sm:$0xff]   ;;  %v567_v10 = vld [vmem:[%s748_s0 + $0x8] sm:$0xff]   ;;  %v570_v13 = vld [vmem:[%s748_s0 + $0x30] sm:$0xff]  }
   0x5   :  { %525 = vmatprep.mubr.bf16.mxu0 %v565_v4  ;;  %533 = vmatprep.mubr.bf16.mxu1 %v566_v5  ;;  %v564_v9 = vld [vmem:[%s747_s1] sm:$0xff]   ;;  %v568_v11 = vld [vmem:[%s748_s0 + $0x28] sm:$0xff]   ;;  %v571_v14 = vld [vmem:[%s748_s0 + $0x18] sm:$0xff]  }
   0x6   :  { %v572_v15 = vld [vmem:[%s748_s0 + $0x38] sm:$0xff]   ;;  %v649_v16 = vld [vmem:[%s749_s2] ss:$0 sm:$0xff]  ;;  %v486_v17 = vld [vmem:[%s750_s3 + $0x8] sm:$0xff]  }
   0x7   :  { %512 = vmatpush3.bf16.msra.mxu0 %v558_v1  ;;  %550 = vmatpush3.bf16.msra.mxu1 %v558_v1  ;;  %v490_v18 = vld [vmem:[%s750_s3 + $0x28] sm:$0xff]   ;;  %v455_v19 = vld [vmem:[%s750_s3] sm:$0xff]   ;;  %v460_v24 = vunpack.c.l.bf16 %v486_v17  ;;  %v461_v36 = vunpack.c.h.bf16 %v486_v17  ;;  %v670_v43 = vld [vmem:[%s750_s3 + $0x18] sm:$0xff]  }
   0x8   :  { %513 = vmatprep.subr.bf16.mxu0 %v559_v2  ;;  %543 = vmatprep.subr.bf16.mxu1 %v559_v2  ;;  %v489_v20 = vld [vmem:[%s750_s3 + $0x20] sm:$0xff]   ;;  %v476_v26 = vunpack.c.l.bf16 %v490_v18  ;;  %v456_v28 = vunpack.c.l.bf16 %v455_v19  ;;  %v477_v38 = vunpack.c.h.bf16 %v490_v18  ;;  %v675_v44 = vld [vmem:[%s750_s3 + $0x38] sm:$0xff]   ;;  %v457_v48 = vunpack.c.h.bf16 %v455_v19  ;;  %v487_v55 = vld [vmem:[%s750_s3 + $0x10] sm:$0xff]  }
   0x9   :  { %v472_v30 = vunpack.c.l.bf16 %v489_v20  ;;  %v473_v50 = vunpack.c.h.bf16 %v489_v20  ;;  %v491_v56 = vld [vmem:[%s750_s3 + $0x30] sm:$0xff]   ;;  %v468_v60 = vunpack.c.l.bf16 %v670_v43  ;;  %v484_v62 = vunpack.c.l.bf16 %v675_v44 }
   0xa   :  { %v469_v17 = vunpack.c.h.bf16 %v670_v43  ;;  %v485_v19 = vunpack.c.h.bf16 %v675_v44 }
   0xb   :  { %514 = vmatpush3.bf16.msra.mxu0 %v559_v2  ;;  %551 = vmatpush3.bf16.msra.mxu1 %v559_v2 }
   0xc   :  { %515 = vmatprep.subr.bf16.mxu0 %v560_v3  ;;  %544 = vmatprep.subr.bf16.mxu1 %v560_v3 }
   0xf   :  { %516 = vmatpush3.bf16.msra.mxu0 %v560_v3  ;;  %552 = vmatpush3.bf16.msra.mxu1 %v560_v3 }
  0x10   :  { %517 = vmatprep.subr.bf16.mxu0 %v561_v6  ;;  %545 = vmatprep.subr.bf16.mxu1 %v561_v6 }
  0x13   :  { %518 = vmatpush3.bf16.msra.mxu0 %v561_v6  ;;  %553 = vmatpush3.bf16.msra.mxu1 %v561_v6  ;;  %v464_v6 = vunpack.c.l.bf16 %v487_v55 }
  0x14   :  { %519 = vmatprep.subr.bf16.mxu0 %v562_v7  ;;  %546 = vmatprep.subr.bf16.mxu1 %v562_v7 }
  0x17   :  { %520 = vmatpush3.bf16.msra.mxu0 %v562_v7  ;;  %554 = vmatpush3.bf16.msra.mxu1 %v562_v7 }
  0x18   :  { %521 = vmatprep.subr.bf16.mxu0 %v563_v8  ;;  %547 = vmatprep.subr.bf16.mxu1 %v563_v8 }
  0x1b   :  { %522 = vmatpush3.bf16.msra.mxu0 %v563_v8  ;;  %555 = vmatpush3.bf16.msra.mxu1 %v563_v8  ;;  %v480_v8 = vunpack.c.l.bf16 %v491_v56 }
  0x1c   :  { %523 = vmatprep.subr.bf16.mxu0 %v564_v9  ;;  %548 = vmatprep.subr.bf16.mxu1 %v564_v9 }
  0x1f   :  { %524 = vmatpush3.bf16.msra.mxu0 %v564_v9  ;;  %556 = vmatpush3.bf16.msra.mxu1 %v564_v9 }
  0x22   :  { %526 = vmatmul.mubr.bf16.vlgmr.msra.gmra.mxu0 %v567_v10  ;;  %534 = vmatmul.mubr.bf16.vlgmr.msra.gmra.mxu1 %v568_v11 }
  0x23   :  { %529 = vmatprep.mubr.bf16.mxu0 %v569_v12  ;;  %537 = vmatprep.mubr.bf16.mxu1 %v570_v13 }
  0x2a   :  { %530 = vmatmul.mubr.bf16.gmra.mxu0 %v571_v14  ;;  %538 = vmatmul.mubr.bf16.gmra.mxu1 %v572_v15 }
  0xe2   :  { %v527_v21 = vpop.f32.mrf.mxu0  ;;  %v535_v22 = vpop.f32.mrf.mxu1 }
  0xe3   :  { %v339_v23 = vadd.f32 %v527_v21, %v649_v16  ;;  %v347_v25 = vadd.f32 %v535_v22, %v649_v16 }
  0xe4   :  { %v216_v27 = vpop.f32.mrf.mxu0  ;;  %v248_v29 = vpop.f32.mrf.mxu1 }
  0xe5   :  { %v355_v31 = vmax.f32 %v339_v23, 0.0  ;;  %v363_v32 = vmax.f32 %v347_v25, 0.0  ;;  %v337_v33 = vadd.f32 %v649_v16, %v216_v27  ;;  %v345_v34 = vadd.f32 %v649_v16, %v248_v29 }
  0xe6   :  { %v528_v35 = vpop.f32.mrf.mxu0  ;;  %v536_v37 = vpop.f32.mrf.mxu1  ;;  %v465_v27 = vunpack.c.h.bf16 %v487_v55  ;;  %v481_v29 = vunpack.c.h.bf16 %v491_v56 }
  0xe7   :  { %v403_v39 = vadd.f32 %v460_v24, %v355_v31  ;;  %v411_v40 = vadd.f32 %v476_v26, %v363_v32  ;;  %v353_v41 = vmax.f32 %v337_v33, 0.0  ;;  %v361_v42 = vmax.f32 %v345_v34, 0.0 }
  0xe8   :  { %v340_v45 = vadd.f32 %v528_v35, %v649_v16  ;;  %v348_v46 = vadd.f32 %v536_v37, %v649_v16  ;;  %v219_v47 = vpop.f32.mrf.mxu0  ;;  %v251_v49 = vpop.f32.mrf.mxu1 }
  0xe9   :  { %419 = vst [vmem:[%s751_s4 + $0x10] sm:$0xff] %v403_v39  ;;  %427 = vst [vmem:[%s751_s4 + $0x50] sm:$0xff] %v411_v40  ;;  %v401_v51 = vadd.f32 %v456_v28, %v353_v41  ;;  %v409_v52 = vadd.f32 %v472_v30, %v361_v42  ;;  %v338_v53 = vadd.f32 %v649_v16, %v219_v47 }
  0xea   :  { %v346_v54 = vadd.f32 %v649_v16, %v251_v49  ;;  %v356_v57 = vmax.f32 %v340_v45, 0.0  ;;  %v364_v58 = vmax.f32 %v348_v46, 0.0  ;;  %v531_v59 = vpop.f32.mrf.mxu0  ;;  %v539_v61 = vpop.f32.mrf.mxu1 }
  0xeb   :  { %417 = vst [vmem:[%s751_s4] sm:$0xff] %v401_v51  ;;  %425 = vst [vmem:[%s751_s4 + $0x40] sm:$0xff] %v409_v52  ;;  %v354_v63 = vmax.f32 %v338_v53, 0.0  ;;  %v343_v1 = vadd.f32 %v531_v59, %v649_v16  ;;  %v351_v2 = vadd.f32 %v539_v61, %v649_v16 }
  0xec   :  { %v362_v0 = vmax.f32 %v346_v54, 0.0  ;;  %v404_v3 = vadd.f32 %v461_v36, %v356_v57  ;;  %v412_v4 = vadd.f32 %v477_v38, %v364_v58  ;;  %v232_v5 = vpop.f32.mrf.mxu0  ;;  %v264_v7 = vpop.f32.mrf.mxu1 }
  0xed   :  { %v402_v9 = vadd.f32 %v457_v48, %v354_v63  ;;  %v359_v11 = vmax.f32 %v343_v1, 0.0  ;;  %v367_v12 = vmax.f32 %v351_v2, 0.0  ;;  %v341_v13 = vadd.f32 %v649_v16, %v232_v5 }
  0xee   :  { %v410_v10 = vadd.f32 %v473_v50, %v362_v0  ;;  %420 = vst [vmem:[%s751_s4 + $0x18] sm:$0xff] %v404_v3  ;;  %428 = vst [vmem:[%s751_s4 + $0x58] sm:$0xff] %v412_v4  ;;  %v349_v14 = vadd.f32 %v649_v16, %v264_v7  ;;  %v532_v15 = vpop.f32.mrf.mxu0  ;;  %v540_v18 = vpop.f32.mrf.mxu1 }
  0xef   :  { %418 = vst [vmem:[%s751_s4 + $0x8] sm:$0xff] %v402_v9  ;;  %v407_v20 = vadd.f32 %v468_v60, %v359_v11  ;;  %v415_v21 = vadd.f32 %v484_v62, %v367_v12  ;;  %v344_v22 = vadd.f32 %v532_v15, %v649_v16  ;;  %v352_v23 = vadd.f32 %v540_v18, %v649_v16 }
  0xf0   :  { %426 = vst [vmem:[%s751_s4 + $0x48] sm:$0xff] %v410_v10  ;;  %v357_v24 = vmax.f32 %v341_v13, 0.0  ;;  %v365_v25 = vmax.f32 %v349_v14, 0.0  ;;  %v235_v26 = vpop.f32.mrf.mxu0  ;;  %v267_v28 = vpop.f32.mrf.mxu1 }
  0xf1   :  { %423 = vst [vmem:[%s751_s4 + $0x30] sm:$0xff] %v407_v20  ;;  %431 = vst [vmem:[%s751_s4 + $0x70] sm:$0xff] %v415_v21  ;;  %v360_v30 = vmax.f32 %v344_v22, 0.0  ;;  %v368_v31 = vmax.f32 %v352_v23, 0.0  ;;  %v342_v32 = vadd.f32 %v649_v16, %v235_v26  ;;  %v350_v33 = vadd.f32 %v649_v16, %v267_v28 }
  0xf2   :  { %v405_v34 = vadd.f32 %v464_v6, %v357_v24  ;;  %v413_v35 = vadd.f32 %v480_v8, %v365_v25 }
  0xf3   :  { %v408_v36 = vadd.f32 %v469_v17, %v360_v30  ;;  %v416_v37 = vadd.f32 %v485_v19, %v368_v31  ;;  %v358_v38 = vmax.f32 %v342_v32, 0.0  ;;  %v366_v39 = vmax.f32 %v350_v33, 0.0 }
  0xf4   :  { %421 = vst [vmem:[%s751_s4 + $0x20] sm:$0xff] %v405_v34  ;;  %429 = vst [vmem:[%s751_s4 + $0x60] sm:$0xff] %v413_v35 }
  0xf5   :  { %424 = vst [vmem:[%s751_s4 + $0x38] sm:$0xff] %v408_v36  ;;  %432 = vst [vmem:[%s751_s4 + $0x78] sm:$0xff] %v416_v37  ;;  %v406_v16 = vadd.f32 %v465_v27, %v358_v38  ;;  %v414_v40 = vadd.f32 %v481_v29, %v366_v39 }
  0xf7   :  { %422 = vst [vmem:[%s751_s4 + $0x28] sm:$0xff] %v406_v16  ;;  %430 = vst [vmem:[%s751_s4 + $0x68] sm:$0xff] %v414_v40 }

// kernel: bottleneck_forward.5
= control target key start
LH: loop header
LB: loop body
LE: loop exit
PB: predicated region body
PF: predicated region fallthrough
CT: control target
= control target key end

     0   :  { %s2537_s12 = smov 0   ;;  %s2539_s13 = smov 0   ;;  %s3073_s0 = inlined_call_operand.vmem [shape: bf16[1,2,10,10,128], index: 0, kind: input, shape index: {}]   ;;  %s3074_s1 = inlined_call_operand.vmem [shape: bf16[9,128,128], index: 1, kind: input, shape index: {}]   ;;  %s3075_s2 = inlined_call_operand.vmem [shape: f32[1,128], index: 2, kind: input, shape index: {}]   ;;  %s3076_s3 = inlined_call_operand.vmem [shape: bf16[2,64,128], index: 3, kind: output, shape index: {}]  }
   0x1   :  { %s2541_s14 = smov 0  }
   0x2 LB: > { %s25_s15 = sadd.s32 1, %s2511_s13  ;;  %p1791_p0 = scmp.ge.s32.totalorder %s2515_s14, 1  ;;  %s2515_s14 = sphi %s2541_s14, %s13_s14   ;;  %s2511_s13 = sphi %s2539_s13, %s3084_s13   ;;  %s2507_s12 = sphi %s2537_s12, %s3083_s12  }
   0x3   : > { %p27_p1 = scmp.ge.s32.totalorder %s25_s15, 2  ;;  %p168_p2 = scmp.lt.s32.totalorder %s2515_s14, 3 }
   0x5   : > { %s3086_s15 = smov (%p27_p1, %s25_s15), 0  ;;  %p169_p3 = pnand %p1791_p0, %p168_p2 }
   0x7   : > { %172 = sbr.rel (%p169_p3) target bundleno = 382 (0x17e), region = 32 }
   0xc   : > { %v2412_v0 = vld [vmem:[%s3074_s1 + $0x78] sm:$0xff]   ;;  %p202_p4 = scmp.lt.s32.totalorder %s2507_s12, 1  ;;  %v2414_v2 = vld [vmem:[%s3074_s1 + $0x70] sm:$0xff]   ;;  %v2416_v4 = vld [vmem:[%s3074_s1 + $0x68] sm:$0xff]   ;;  %vm299_vm0 = vcmask 1046528   ;;  %vm579_vm1 = vcmask 1045504  }
   0xd   : > { %v2413_v1 = vld [vmem:[%s3074_s1 + $0x38] sm:$0xff]   ;;  %2155 = vmatprep.subr.bf16.mxu0 %v2412_v0  ;;  %v2415_v3 = vld [vmem:[%s3074_s1 + $0x30] sm:$0xff]   ;;  %v2417_v5 = vld [vmem:[%s3074_s1 + $0x28] sm:$0xff]  }
   0xe   : > { %2179 = vmatprep.subr.bf16.mxu1 %v2413_v1  ;;  %2156 = vmatpush3.bf16.msra.mxu0 %v2412_v0  ;;  %s3088_s12 = smov (!%p202_p4, %s2507_s12), 1  ;;  %v2418_v6 = vld [vmem:[%s3074_s1 + $0x60] sm:$0xff]   ;;  %v2420_v8 = vld [vmem:[%s3074_s1 + $0x58] sm:$0xff]   ;;  %v2422_v10 = vld [vmem:[%s3074_s1 + $0x50] sm:$0xff]  }
   0xf   : > { %2180 = vmatpush3.bf16.msra.mxu1 %v2413_v1  ;;  %2157 = vmatprep.subr.bf16.mxu0 %v2414_v2  ;;  %v2419_v7 = vld [vmem:[%s3074_s1 + $0x20] sm:$0xff]   ;;  %s2387_s5 = smul.u32 80, %s3088_s12  ;;  %v2421_v9 = vld [vmem:[%s3074_s1 + $0x18] sm:$0xff]   ;;  %v2423_v11 = vld [vmem:[%s3074_s1 + $0x10] sm:$0xff]   ;;  %s2015_s30 = sshll.u32 %s3088_s12, 5 }
  0x10   : > { %2181 = vmatprep.subr.bf16.mxu1 %v2415_v3  ;;  %v2424_v31 = vld [vmem:[%s3074_s1 + $0x48] sm:$0xff]   ;;  %v2426_v42 = vld [vmem:[%s3074_s1 + $0x40] sm:$0xff]   ;;  %v2430_v44 = vld [vmem:[%s3074_s1 + $0xb8] sm:$0xff]   ;;  %s221_s6 = scalar_lea.vmem %s3076_s3, %s2015_s30 }
  0x11   : > { %s2591_s16 = scalar_lea.vmem %s3073_s0, %s2387_s5  ;;  %v2425_v33 = vld [vmem:[%s3074_s1 + $0x8] sm:$0xff]   ;;  %v2427_v43 = vld [vmem:[%s3074_s1] sm:$0xff]   ;;  %v2431_v47 = vld [vmem:[%s3074_s1 + $0xf8] sm:$0xff]  }
  0x12   : > { %2158 = vmatpush3.bf16.msra.mxu0 %v2414_v2  ;;  %v223_v12 = vld [vmem:[%s2591_s16] sm:$0xf]  ;;  %v224_v13 = vld [vmem:[%s2591_s16 + $0x4] sm:$0x1]  ;;  %v2602_v14 = vld [vmem:[%s2591_s16 + $0x8] sm:$0xf] }
  0x13   : > { %2182 = vmatpush3.bf16.msra.mxu1 %v2415_v3  ;;  %2159 = vmatprep.subr.bf16.mxu0 %v2416_v4  ;;  %v226_v15 = vld [vmem:[%s2591_s16 + $0xc] sm:$0x1]  ;;  %v2606_v16 = vld [vmem:[%s2591_s16 + $0x10] sm:$0xf]  ;;  %v2609_v17 = vld [vmem:[%s2591_s16 + $0x14] sm:$0x1]  ;;  %v243_v18 = vunpack.c.l.bf16 %v223_v12  ;;  %v244_v19 = vunpack.c.l.bf16 %v224_v13  ;;  %v245_v20 = vunpack.c.l.bf16 %v2602_v14  ;;  %v1795_v21 = vcombine.low %v223_v12, %v2602_v14 }
  0x14   : > { %2183 = vmatprep.subr.bf16.mxu1 %v2417_v5  ;;  %v246_v22 = vunpack.c.l.bf16 %v226_v15  ;;  %v247_v23 = vunpack.c.l.bf16 %v2606_v16  ;;  %v248_v24 = vunpack.c.l.bf16 %v2609_v17  ;;  %v2616_v25 = vld [vmem:[%s2591_s16 + $0x18] sm:$0xf]  ;;  %v2619_v26 = vld [vmem:[%s2591_s16 + $0x1c] sm:$0x1]  ;;  %v2432_v53 = vld [vmem:[%s3074_s1 + $0xb0] sm:$0xff]  }
  0x15   : > { %v300_v27 = vrot.slane %v243_v18, 1  ;;  %v301_v28 = vrot.slane %v244_v19, 1  ;;  %v303_v29 = vrot.slane %v245_v20, 1  ;;  %2195 = vmatprep.mubr.bf16.mxu1 %v1795_v21  ;;  %v249_v30 = vunpack.c.l.bf16 %v2616_v25  ;;  %v2668_v54 = vld [vmem:[%s2591_s16 + $0x20] sm:$0xf]  ;;  %v2435_v21 = vld [vmem:[%s3074_s1 + $0xe8] sm:$0xff]  }
  0x16   : > { %2160 = vmatpush3.bf16.msra.mxu0 %v2416_v4  ;;  %v304_v32 = vrot.slane %v246_v22, 1  ;;  %v250_v35 = vunpack.c.l.bf16 %v2619_v26  ;;  %v306_v37 = vrot.slane %v247_v23, 1  ;;  %v307_v38 = vrot.slane %v248_v24, 1  ;;  %v2671_v55 = vld [vmem:[%s2591_s16 + $0x24] sm:$0x1] }
  0x17   : > { %2184 = vmatpush3.bf16.msra.mxu1 %v2417_v5  ;;  %2161 = vmatprep.subr.bf16.mxu0 %v2418_v6  ;;  %v302_v34 = vsel %vm299_vm0, %v300_v27, %v301_v28  ;;  %v309_v40 = vrot.slane %v249_v30, 1  ;;  %v580_v48 = vrot.slane %v243_v18, 2  ;;  %v581_v49 = vrot.slane %v244_v19, 2  ;;  %v2674_v56 = vld [vmem:[%s2591_s16 + $0x28] sm:$0xf] }
  0x18   : > { %2185 = vmatprep.subr.bf16.mxu1 %v2419_v7  ;;  %v2631_v36 = vsel %vm299_vm0, %v303_v29, %v304_v32  ;;  %v310_v41 = vrot.slane %v250_v35, 1  ;;  %v2652_v45 = vsel %vm299_vm0, %v306_v37, %v307_v38  ;;  %v583_v50 = vrot.slane %v245_v20, 2  ;;  %v2681_v58 = vld [vmem:[%s2591_s16 + $0x2c] sm:$0x1]  ;;  %v2687_v62 = vld [vmem:[%s2591_s16 + $0x30] sm:$0xf] }
  0x19   : > { %v332_v39 = vpack.c.bf16 %v2631_v36, %v302_v34  ;;  %v584_v51 = vrot.slane %v246_v22, 2  ;;  %v2678_v57 = vcombine.low %v2606_v16, %v2616_v25  ;;  %v251_v59 = vunpack.c.l.bf16 %v2668_v54  ;;  %v2690_v63 = vld [vmem:[%s2591_s16 + $0x34] sm:$0x1]  ;;  %v2698_v2 = vld [vmem:[%s2591_s16 + $0x38] sm:$0xf]  ;;  %v2434_v18 = vld [vmem:[%s3074_s1 + $0xa8] sm:$0xff]  }
  0x1a   : > { %2162 = vmatpush3.bf16.msra.mxu0 %v2418_v6  ;;  %v2655_v46 = vsel %vm299_vm0, %v309_v40, %v310_v41  ;;  %v252_v60 = vunpack.c.l.bf16 %v2671_v55  ;;  %v253_v61 = vunpack.c.l.bf16 %v2674_v56  ;;  %v254_v0 = vunpack.c.l.bf16 %v2681_v58  ;;  %v2701_v3 = vld [vmem:[%s2591_s16 + $0x3c] sm:$0x1]  ;;  %v2433_v6 = vld [vmem:[%s3074_s1 + $0xf0] sm:$0xff]   ;;  %v2436_v38 = vld [vmem:[%s3074_s1 + $0xa0] sm:$0xff]  }
  0x1b   : > { %2186 = vmatpush3.bf16.msra.mxu1 %v2419_v7  ;;  %2163 = vmatprep.subr.bf16.mxu0 %v2420_v8  ;;  %v2662_v52 = vpack.c.bf16 %v2655_v46, %v2652_v45  ;;  %v2695_v1 = vcombine.low %v2668_v54, %v2674_v56  ;;  %v255_v4 = vunpack.c.l.bf16 %v2687_v62  ;;  %v256_v5 = vunpack.c.l.bf16 %v2690_v63  ;;  %v2450_v55 = vld [vmem:[%s3074_s1 + $0x138] sm:$0xff]  }
  0x1c   : > { %2187 = vmatprep.subr.bf16.mxu1 %v2421_v9  ;;  %2171 = vmatprep.mubr.bf16.mxu0 %v332_v39  ;;  %v312_v7 = vrot.slane %v251_v59, 1  ;;  %v258_v12 = vunpack.c.l.bf16 %v2701_v3  ;;  %v582_v32 = vsel %vm579_vm1, %v580_v48, %v581_v49  ;;  %v2762_v37 = vcombine.low %v2687_v62, %v2698_v2  ;;  %v2437_v39 = vld [vmem:[%s3074_s1 + $0xe0] sm:$0xff]   ;;  %v2444_v48 = vld [vmem:[%s3074_s1 + $0x88] sm:$0xff]  }
  0x1d   : > { %v318_v13 = vrot.slane %v255_v4, 1  ;;  %v319_v15 = vrot.slane %v256_v5, 1  ;;  %v1855_v41 = vcombine.low %v2602_v14, %v2606_v16  ;;  %v2442_v14 = vld [vmem:[%s3074_s1 + $0x90] sm:$0xff]   ;;  %v587_v49 = vrot.slane %v248_v24, 2  ;;  %v2807_v24 = vld [vmem:[%s2591_s16 + $0x40] sm:$0xf] }
  0x1e   : > { %2164 = vmatpush3.bf16.msra.mxu0 %v2420_v8  ;;  %v313_v8 = vrot.slane %v252_v60, 1  ;;  %v322_v28 = vrot.slane %v258_v12, 1  ;;  %v590_v16 = vrot.slane %v250_v35, 2  ;;  %v592_v17 = vrot.slane %v251_v59, 2 }
  0x1f   : > { %2188 = vmatpush3.bf16.msra.mxu1 %v2421_v9  ;;  %2165 = vmatprep.subr.bf16.mxu0 %v2422_v10  ;;  %v315_v9 = vrot.slane %v253_v61, 1  ;;  %v2739_v27 = vsel %vm299_vm0, %v318_v13, %v319_v15  ;;  %v593_v26 = vrot.slane %v252_v60, 2  ;;  %v259_v35 = vunpack.c.l.bf16 %v2807_v24  ;;  %v240_v60 = vld [vmem:[%s2591_s16 + $0x44] sm:$0x1] }
  0x20   : > { %2189 = vmatprep.subr.bf16.mxu1 %v2423_v11  ;;  %v2728_v19 = vsel %vm299_vm0, %v312_v7, %v313_v8  ;;  %v596_v7 = vrot.slane %v254_v0, 2  ;;  %v1857_v3 = vcombine.low %v2674_v56, %v2687_v62  ;;  %v2455_v56 = vld [vmem:[%s3074_s1 + $0x168] sm:$0xff]  }
  0x21   : > { %v898_v58 = vrot.slane %v259_v35, 1  ;;  %v2844_v13 = vsel %vm579_vm1, %v592_v17, %v593_v26  ;;  %v2463_v26 = vld [vmem:[%s3074_s1 + $0x150] sm:$0xff]  }
  0x22   : > { %2166 = vmatpush3.bf16.msra.mxu0 %v2422_v10  ;;  %v257_v10 = vunpack.c.l.bf16 %v2698_v2 }
  0x23   : > { %2190 = vmatpush3.bf16.msra.mxu1 %v2423_v11  ;;  %2167 = vmatprep.subr.bf16.mxu0 %v2424_v31  ;;  %v316_v11 = vrot.slane %v254_v0, 1  ;;  %v1856_v0 = vcombine.low %v2616_v25, %v2668_v54  ;;  %v602_v54 = vrot.slane %v258_v12, 2 }
  0x24   : > { %2191 = vmatprep.subr.bf16.mxu1 %v2425_v33  ;;  %v321_v20 = vrot.slane %v257_v10, 1  ;;  %v601_v25 = vrot.slane %v257_v10, 2 }
  0x25   : > { %v2736_v22 = vsel %vm299_vm0, %v315_v9, %v316_v11  ;;  %v260_v9 = vunpack.c.l.bf16 %v240_v60  ;;  %v2452_v11 = vld [vmem:[%s3074_s1 + $0x130] sm:$0xff]   ;;  %v2467_v60 = vld [vmem:[%s3074_s1 + $0x140] sm:$0xff]  }
  0x26   : > { %2168 = vmatpush3.bf16.msra.mxu0 %v2424_v31  ;;  %v2745_v29 = vpack.c.bf16 %v2736_v22, %v2728_v19  ;;  %v2749_v31 = vsel %vm299_vm0, %v321_v20, %v322_v28  ;;  %v599_v20 = vrot.slane %v256_v5, 2  ;;  %v2453_v28 = vld [vmem:[%s3074_s1 + $0x170] sm:$0xff]   ;;  %v2876_v12 = vsel %vm579_vm1, %v601_v25, %v602_v54  ;;  %v2477_v25 = vld [vmem:[%s3074_s1 + $0x1d8] sm:$0xff]  }
  0x27   : > { %2192 = vmatpush3.bf16.msra.mxu1 %v2425_v33  ;;  %2169 = vmatprep.subr.bf16.mxu0 %v2426_v42  ;;  %v2753_v33 = vsel %vm579_vm1, %v583_v50, %v584_v51  ;;  %v2758_v34 = vpack.c.bf16 %v2749_v31, %v2739_v27  ;;  %v2445_v50 = vld [vmem:[%s3074_s1 + $0xc8] sm:$0xff]   ;;  %v589_v51 = vrot.slane %v249_v30, 2  ;;  %v2447_v30 = vld [vmem:[%s3074_s1 + $0xc0] sm:$0xff]   ;;  %v2479_v54 = vld [vmem:[%s3074_s1 + $0x1d0] sm:$0xff]  }
  0x28   : > { %2193 = vmatprep.subr.bf16.mxu1 %v2427_v43  ;;  %v612_v40 = vpack.c.bf16 %v2753_v33, %v582_v32  ;;  %v2454_v32 = vld [vmem:[%s3074_s1 + $0x128] sm:$0xff]  }
  0x29   : > { %v2819_v59 = vsel %vm579_vm1, %v589_v51, %v590_v16  ;;  %v2462_v16 = vld [vmem:[%s3074_s1 + $0x110] sm:$0xff]  }
  0x2a   : > { %2170 = vmatpush3.bf16.msra.mxu0 %v2426_v42  ;;  %v2438_v42 = vld [vmem:[%s3074_s1 + $0x98] sm:$0xff]  }
  0x2b   : > { %2194 = vmatpush3.bf16.msra.mxu1 %v2427_v43  ;;  %2203 = vmatprep.subr.bf16.mxu0 %v2430_v44  ;;  %v2439_v43 = vld [vmem:[%s3074_s1 + $0xd8] sm:$0xff]  }
  0x2c   : > { %2227 = vmatprep.subr.bf16.mxu1 %v2431_v47 }
  0x2d   : > { %2172 = vmatmul.mubr.bf16.vlgmr.msra.gmra.mxu0 %v2662_v52 }
  0x2e   : > { %2196 = vmatmul.mubr.bf16.vlgmr.msra.gmra.mxu1 %v2678_v57  ;;  %2204 = vmatpush3.bf16.msra.mxu0 %v2430_v44  ;;  %v2443_v44 = vld [vmem:[%s3074_s1 + $0xd0] sm:$0xff]  }
  0x2f   : > { %2228 = vmatpush3.bf16.msra.mxu1 %v2431_v47  ;;  %2205 = vmatprep.subr.bf16.mxu0 %v2432_v53  ;;  %v586_v47 = vrot.slane %v247_v23, 2  ;;  %v2446_v23 = vld [vmem:[%s3074_s1 + $0x80] sm:$0xff]  }
  0x30   : > { %2229 = vmatprep.subr.bf16.mxu1 %v2433_v6  ;;  %2199 = vmatprep.mubr.bf16.mxu1 %v2695_v1 }
  0x31   : > { %2175 = vmatprep.mubr.bf16.mxu0 %v2745_v29 }
  0x32   : > { %2206 = vmatpush3.bf16.msra.mxu0 %v2432_v53  ;;  %v2816_v53 = vsel %vm579_vm1, %v586_v47, %v587_v49  ;;  %v1045_v47 = vrot.slane %v260_v9, 2 }
  0x33   : > { %2230 = vmatpush3.bf16.msra.mxu1 %v2433_v6  ;;  %2207 = vmatprep.subr.bf16.mxu0 %v2434_v18  ;;  %v595_v6 = vrot.slane %v253_v61, 2  ;;  %v2831_v8 = vpack.c.bf16 %v2819_v59, %v2816_v53  ;;  %v2451_v61 = vld [vmem:[%s3074_s1 + $0x178] sm:$0xff]  }
  0x34   : > { %2231 = vmatprep.subr.bf16.mxu1 %v2435_v21 }
  0x35   : > { %2176 = vmatmul.mubr.bf16.gmra.mxu0 %v2758_v34  ;;  %v2847_v15 = vsel %vm579_vm1, %v595_v6, %v596_v7  ;;  %v2464_v6 = vld [vmem:[%s3074_s1 + $0x108] sm:$0xff]  }
  0x36   : > { %2208 = vmatpush3.bf16.msra.mxu0 %v2434_v18  ;;  %2200 = vmatmul.mubr.bf16.gmra.mxu1 %v2762_v37  ;;  %v598_v18 = vrot.slane %v255_v4, 2  ;;  %v2862_v4 = vpack.c.bf16 %v2847_v15, %v2844_v13  ;;  %v2465_v7 = vld [vmem:[%s3074_s1 + $0x148] sm:$0xff]  }
  0x37   : > { %2232 = vmatpush3.bf16.msra.mxu1 %v2435_v21  ;;  %2209 = vmatprep.subr.bf16.mxu0 %v2436_v38  ;;  %v899_v21 = vrot.slane %v260_v9, 1  ;;  %v2469_v9 = vld [vmem:[%s3074_s1 + $0x1f8] sm:$0xff]  }
  0x38   : > { %2233 = vmatprep.subr.bf16.mxu1 %v2437_v39  ;;  %2219 = vmatprep.mubr.bf16.mxu0 %v612_v40  ;;  %v2873_v10 = vsel %vm579_vm1, %v598_v18, %v599_v20  ;;  %v902_v40 = vpack.c.bf16 %v2652_v45, %v2631_v36  ;;  %v2461_v36 = vld [vmem:[%s3074_s1 + $0x158] sm:$0xff]   ;;  %v2471_v18 = vld [vmem:[%s3074_s1 + $0x1f0] sm:$0xff]   ;;  %v904_v20 = vpack.c.bf16 %v2739_v27, %v2736_v22  ;;  %v2474_v27 = vld [vmem:[%s3074_s1 + $0x1a0] sm:$0xff]  }
  0x39   : > { %2243 = vmatprep.mubr.bf16.mxu1 %v1855_v41  ;;  %v2865_v63 = vsel %vm299_vm0, %v898_v58, %v899_v21  ;;  %v2887_v62 = vpack.c.bf16 %v2876_v12, %v2873_v10  ;;  %v2459_v41 = vld [vmem:[%s3074_s1 + $0x160] sm:$0xff]   ;;  %v903_v58 = vpack.c.bf16 %v2728_v19, %v2655_v46  ;;  %v1050_v46 = vpack.c.bf16 %v2873_v10, %v2847_v15  ;;  %v2472_v19 = vld [vmem:[%s3074_s1 + $0x1a8] sm:$0xff]   ;;  %v2476_v15 = vld [vmem:[%s3074_s1 + $0x198] sm:$0xff]  }
  0x3a   : > { %2210 = vmatpush3.bf16.msra.mxu0 %v2436_v38  ;;  %v905_v5 = vpack.c.bf16 %v2865_v63, %v2749_v31  ;;  %v1858_v38 = vcombine.low %v2698_v2, %v2807_v24  ;;  %v2460_v2 = vld [vmem:[%s3074_s1 + $0x118] sm:$0xff]   ;;  %v2478_v31 = vld [vmem:[%s3074_s1 + $0x190] sm:$0xff]   ;;  %v2482_v21 = vld [vmem:[%s3074_s1 + $0x180] sm:$0xff]  }
  0x3b   : > { %2234 = vmatpush3.bf16.msra.mxu1 %v2437_v39  ;;  %2211 = vmatprep.subr.bf16.mxu0 %v2438_v42  ;;  %v2458_v39 = vld [vmem:[%s3074_s1 + $0x120] sm:$0xff]   ;;  %v2487_v10 = vld [vmem:[%s3074_s1 + $0x228] sm:$0xff]  }
  0x3c   : > { %2235 = vmatprep.subr.bf16.mxu1 %v2439_v43 }
  0x3e   : > { %2212 = vmatpush3.bf16.msra.mxu0 %v2438_v42  ;;  %v1048_v42 = vpack.c.bf16 %v2816_v53, %v2753_v33 }
  0x3f   : > { %2236 = vmatpush3.bf16.msra.mxu1 %v2439_v43  ;;  %2213 = vmatprep.subr.bf16.mxu0 %v2442_v14  ;;  %v2906_v43 = vld [vmem:[%s2591_s16 + $0x48] sm:$0xf] }
  0x40   : > { %2237 = vmatprep.subr.bf16.mxu1 %v2443_v44  ;;  %v261_v45 = vunpack.c.l.bf16 %v2906_v43 }
  0x42   : > { %2214 = vmatpush3.bf16.msra.mxu0 %v2442_v14  ;;  %v242_v14 = vld [vmem:[%s2591_s16 + $0x4c] sm:$0x1]  ;;  %v1331_v33 = vrot.slane %v261_v45, 1  ;;  %v1474_v49 = vrot.slane %v261_v45, 2 }
  0x43   : > { %2238 = vmatpush3.bf16.msra.mxu1 %v2443_v44  ;;  %2215 = vmatprep.subr.bf16.mxu0 %v2444_v48  ;;  %v1044_v44 = vrot.slane %v259_v35, 2 }
  0x44   : > { %2239 = vmatprep.subr.bf16.mxu1 %v2445_v50 }
  0x46   : > { %2216 = vmatpush3.bf16.msra.mxu0 %v2444_v48  ;;  %v262_v48 = vunpack.c.l.bf16 %v242_v14 }
  0x47   : > { %2240 = vmatpush3.bf16.msra.mxu1 %v2445_v50  ;;  %2217 = vmatprep.subr.bf16.mxu0 %v2446_v23 }
  0x48   : > { %2241 = vmatprep.subr.bf16.mxu1 %v2447_v30  ;;  %v1332_v50 = vrot.slane %v262_v48, 1  ;;  %v1475_v51 = vrot.slane %v262_v48, 2 }
  0x4a   : > { %2218 = vmatpush3.bf16.msra.mxu0 %v2446_v23  ;;  %v2919_v23 = vsel %vm579_vm1, %v1044_v44, %v1045_v47  ;;  %v2922_v17 = vsel %vm299_vm0, %v1331_v33, %v1332_v50 }
  0x4b   : > { %2242 = vmatpush3.bf16.msra.mxu1 %v2447_v30  ;;  %2251 = vmatprep.subr.bf16.mxu0 %v2450_v55  ;;  %v2925_v30 = vsel %vm579_vm1, %v1474_v49, %v1475_v51  ;;  %v1335_v35 = vpack.c.bf16 %v2922_v17, %v2865_v63  ;;  %v1051_v22 = vpack.c.bf16 %v2919_v23, %v2876_v12 }
  0x4c   : > { %2275 = vmatprep.subr.bf16.mxu1 %v2451_v61  ;;  %v1478_v53 = vpack.c.bf16 %v2925_v30, %v2919_v23  ;;  %v1931_v12 = vcombine.low %v2807_v24, %v2906_v43  ;;  %v2492_v24 = vld [vmem:[%s3074_s1 + $0x200] sm:$0xff]  }
  0x4d   : > { %2220 = vmatmul.mubr.bf16.vlgmr.msra.gmra.mxu0 %v2831_v8 }
  0x4e   : > { %2244 = vmatmul.mubr.bf16.vlgmr.msra.gmra.mxu1 %v1856_v0  ;;  %2252 = vmatpush3.bf16.msra.mxu0 %v2450_v55  ;;  %v2466_v55 = vld [vmem:[%s3074_s1 + $0x100] sm:$0xff]   ;;  %v1049_v0 = vpack.c.bf16 %v2844_v13, %v2819_v59  ;;  %v2473_v59 = vld [vmem:[%s3074_s1 + $0x1e8] sm:$0xff]  }
  0x4f   : > { %2276 = vmatpush3.bf16.msra.mxu1 %v2451_v61  ;;  %2253 = vmatprep.subr.bf16.mxu0 %v2452_v11  ;;  %v2468_v61 = vld [vmem:[%s3074_s1 + $0x1b8] sm:$0xff]   ;;  %v2475_v13 = vld [vmem:[%s3074_s1 + $0x1e0] sm:$0xff]  }
  0x50   : > { %2277 = vmatprep.subr.bf16.mxu1 %v2453_v28  ;;  %2223 = vmatprep.mubr.bf16.mxu0 %v2862_v4 }
  0x51   : > { %2247 = vmatprep.mubr.bf16.mxu1 %v1857_v3  ;;  %v2484_v3 = vld [vmem:[%s3074_s1 + $0x238] sm:$0xff]  }
  0x52   : > { %2254 = vmatpush3.bf16.msra.mxu0 %v2452_v11  ;;  %v2470_v11 = vld [vmem:[%s3074_s1 + $0x1b0] sm:$0xff]  }
  0x53   : > { %2278 = vmatpush3.bf16.msra.mxu1 %v2453_v28  ;;  %2255 = vmatprep.subr.bf16.mxu0 %v2454_v32  ;;  %v2483_v28 = vld [vmem:[%s3074_s1 + $0x1c0] sm:$0xff]  }
  0x54   : > { %2279 = vmatprep.subr.bf16.mxu1 %v2455_v56 }
  0x55   : > { %2224 = vmatmul.mubr.bf16.gmra.mxu0 %v2887_v62 }
  0x56   : > { %2256 = vmatpush3.bf16.msra.mxu0 %v2454_v32  ;;  %2248 = vmatmul.mubr.bf16.gmra.mxu1 %v1858_v38 }
  0x57   : > { %2280 = vmatpush3.bf16.msra.mxu1 %v2455_v56  ;;  %2257 = vmatprep.subr.bf16.mxu0 %v2458_v39 }
  0x58   : > { %2281 = vmatprep.subr.bf16.mxu1 %v2459_v41  ;;  %2267 = vmatprep.mubr.bf16.mxu0 %v902_v40 }
  0x59   : > { %2291 = vmatprep.mubr.bf16.mxu1 %v1048_v42 }
  0x5a   : > { %2258 = vmatpush3.bf16.msra.mxu0 %v2458_v39 }
  0x5b   : > { %2282 = vmatpush3.bf16.msra.mxu1 %v2459_v41  ;;  %2259 = vmatprep.subr.bf16.mxu0 %v2460_v2 }
  0x5c   : > { %2283 = vmatprep.subr.bf16.mxu1 %v2461_v36 }
  0x5e   : > { %2260 = vmatpush3.bf16.msra.mxu0 %v2460_v2 }
  0x5f   : > { %2284 = vmatpush3.bf16.msra.mxu1 %v2461_v36  ;;  %2261 = vmatprep.subr.bf16.mxu0 %v2462_v16 }
  0x60   : > { %2285 = vmatprep.subr.bf16.mxu1 %v2463_v26 }
  0x62   : > { %2262 = vmatpush3.bf16.msra.mxu0 %v2462_v16 }
  0x63   : > { %2286 = vmatpush3.bf16.msra.mxu1 %v2463_v26  ;;  %2263 = vmatprep.subr.bf16.mxu0 %v2464_v6 }
  0x64   : > { %2287 = vmatprep.subr.bf16.mxu1 %v2465_v7 }
  0x66   : > { %2264 = vmatpush3.bf16.msra.mxu0 %v2464_v6 }
  0x67   : > { %2288 = vmatpush3.bf16.msra.mxu1 %v2465_v7  ;;  %2265 = vmatprep.subr.bf16.mxu0 %v2466_v55 }
  0x68   : > { %2289 = vmatprep.subr.bf16.mxu1 %v2467_v60 }
  0x6a   : > { %2266 = vmatpush3.bf16.msra.mxu0 %v2466_v55 }
  0x6b   : > { %2290 = vmatpush3.bf16.msra.mxu1 %v2467_v60  ;;  %2299 = vmatprep.subr.bf16.mxu0 %v2468_v61 }
  0x6c   : > { %2323 = vmatprep.subr.bf16.mxu1 %v2469_v9 }
  0x6d   : > { %2268 = vmatmul.mubr.bf16.vlgmr.msra.gmra.mxu0 %v903_v58 }
  0x6e   : > { %2292 = vmatmul.mubr.bf16.vlgmr.msra.gmra.mxu1 %v1049_v0  ;;  %2300 = vmatpush3.bf16.msra.mxu0 %v2468_v61 }
  0x6f   : > { %2324 = vmatpush3.bf16.msra.mxu1 %v2469_v9  ;;  %2301 = vmatprep.subr.bf16.mxu0 %v2470_v11 }
  0x70   : > { %2325 = vmatprep.subr.bf16.mxu1 %v2471_v18  ;;  %2271 = vmatprep.mubr.bf16.mxu0 %v904_v20 }
  0x71   : > { %2295 = vmatprep.mubr.bf16.mxu1 %v1050_v46 }
  0x72   : > { %2302 = vmatpush3.bf16.msra.mxu0 %v2470_v11 }
  0x73   : > { %2326 = vmatpush3.bf16.msra.mxu1 %v2471_v18  ;;  %2303 = vmatprep.subr.bf16.mxu0 %v2472_v19 }
  0x74   : > { %2327 = vmatprep.subr.bf16.mxu1 %v2473_v59 }
  0x75   : > { %2272 = vmatmul.mubr.bf16.gmra.mxu0 %v905_v5  ;;  %v2485_v5 = vld [vmem:[%s3074_s1 + $0x230] sm:$0xff]  }
  0x76   : > { %2304 = vmatpush3.bf16.msra.mxu0 %v2472_v19  ;;  %2296 = vmatmul.mubr.bf16.gmra.mxu1 %v1051_v22 }
  0x77   : > { %2328 = vmatpush3.bf16.msra.mxu1 %v2473_v59  ;;  %2305 = vmatprep.subr.bf16.mxu0 %v2474_v27 }
  0x78   : > { %2329 = vmatprep.subr.bf16.mxu1 %v2475_v13  ;;  %2315 = vmatprep.mubr.bf16.mxu0 %v2678_v57  ;;  %v2480_v57 = vld [vmem:[%s3074_s1 + $0x188] sm:$0xff]  }
  0x79   : > { %2339 = vmatprep.mubr.bf16.mxu1 %v2662_v52  ;;  %v2481_v52 = vld [vmem:[%s3074_s1 + $0x1c8] sm:$0xff]  }
  0x7a   : > { %2306 = vmatpush3.bf16.msra.mxu0 %v2474_v27 }
  0x7b   : > { %2330 = vmatpush3.bf16.msra.mxu1 %v2475_v13  ;;  %2307 = vmatprep.subr.bf16.mxu0 %v2476_v15 }
  0x7c   : > { %2331 = vmatprep.subr.bf16.mxu1 %v2477_v25 }
  0x7e   : > { %2308 = vmatpush3.bf16.msra.mxu0 %v2476_v15 }
  0x7f   : > { %2332 = vmatpush3.bf16.msra.mxu1 %v2477_v25  ;;  %2309 = vmatprep.subr.bf16.mxu0 %v2478_v31 }
  0x80   : > { %2333 = vmatprep.subr.bf16.mxu1 %v2479_v54 }
  0x82   : > { %2310 = vmatpush3.bf16.msra.mxu0 %v2478_v31 }
  0x83   : > { %2334 = vmatpush3.bf16.msra.mxu1 %v2479_v54  ;;  %2311 = vmatprep.subr.bf16.mxu0 %v2480_v57 }
  0x84   : > { %2335 = vmatprep.subr.bf16.mxu1 %v2481_v52 }
  0x86   : > { %2312 = vmatpush3.bf16.msra.mxu0 %v2480_v57 }
  0x87   : > { %2336 = vmatpush3.bf16.msra.mxu1 %v2481_v52  ;;  %2313 = vmatprep.subr.bf16.mxu0 %v2482_v21 }
  0x88   : > { %2337 = vmatprep.subr.bf16.mxu1 %v2483_v28 }
  0x8a   : > { %2314 = vmatpush3.bf16.msra.mxu0 %v2482_v21 }
  0x8b   : > { %2338 = vmatpush3.bf16.msra.mxu1 %v2483_v28  ;;  %2347 = vmatprep.subr.bf16.mxu0 %v2484_v3 }
  0x8c   : > { %2371 = vmatprep.subr.bf16.mxu1 %v2484_v3 }
  0x8d   : > { %2316 = vmatmul.mubr.bf16.vlgmr.msra.gmra.mxu0 %v2695_v1  ;;  %v2488_v1 = vld [vmem:[%s3074_s1 + $0x220] sm:$0xff]  }
  0x8e   : > { %2340 = vmatmul.mubr.bf16.vlgmr.msra.gmra.mxu1 %v2745_v29  ;;  %2348 = vmatpush3.bf16.msra.mxu0 %v2484_v3  ;;  %v2489_v29 = vld [vmem:[%s3074_s1 + $0x218] sm:$0xff]  }
  0x8f   : > { %2379 = vmatpush3.bf16.msra.mxu1 %v2484_v3  ;;  %2349 = vmatprep.subr.bf16.mxu0 %v2485_v5 }
  0x90   : > { %2372 = vmatprep.subr.bf16.mxu1 %v2485_v5  ;;  %2319 = vmatprep.mubr.bf16.mxu0 %v2762_v37  ;;  %v2491_v37 = vld [vmem:[%s3074_s1 + $0x208] sm:$0xff]  }
  0x91   : > { %2343 = vmatprep.mubr.bf16.mxu1 %v2758_v34  ;;  %v2490_v34 = vld [vmem:[%s3074_s1 + $0x210] sm:$0xff]  }
  0x92   : > { %2350 = vmatpush3.bf16.msra.mxu0 %v2485_v5 }
  0x93   : > { %2380 = vmatpush3.bf16.msra.mxu1 %v2485_v5  ;;  %2351 = vmatprep.subr.bf16.mxu0 %v2487_v10 }
  0x94   : > { %2373 = vmatprep.subr.bf16.mxu1 %v2487_v10 }
  0x95   : > { %2320 = vmatmul.mubr.bf16.gmra.mxu0 %v1931_v12 }
  0x96   : > { %2352 = vmatpush3.bf16.msra.mxu0 %v2487_v10  ;;  %2344 = vmatmul.mubr.bf16.gmra.mxu1 %v1335_v35 }
  0x97   : > { %2381 = vmatpush3.bf16.msra.mxu1 %v2487_v10  ;;  %2353 = vmatprep.subr.bf16.mxu0 %v2488_v1 }
  0x98   : > { %2374 = vmatprep.subr.bf16.mxu1 %v2488_v1  ;;  %2363 = vmatprep.mubr.bf16.mxu0 %v2831_v8 }
  0x99   : > { %2367 = vmatprep.mubr.bf16.mxu1 %v2887_v62 }
  0x9a   : > { %2354 = vmatpush3.bf16.msra.mxu0 %v2488_v1 }
  0x9b   : > { %2382 = vmatpush3.bf16.msra.mxu1 %v2488_v1  ;;  %2355 = vmatprep.subr.bf16.mxu0 %v2489_v29 }
  0x9c   : > { %2375 = vmatprep.subr.bf16.mxu1 %v2489_v29 }
  0x9e   : > { %2356 = vmatpush3.bf16.msra.mxu0 %v2489_v29 }
  0x9f   : > { %2383 = vmatpush3.bf16.msra.mxu1 %v2489_v29  ;;  %2357 = vmatprep.subr.bf16.mxu0 %v2490_v34 }
  0xa0   : > { %2376 = vmatprep.subr.bf16.mxu1 %v2490_v34 }
  0xa2   : > { %2358 = vmatpush3.bf16.msra.mxu0 %v2490_v34 }
  0xa3   : > { %2384 = vmatpush3.bf16.msra.mxu1 %v2490_v34  ;;  %2359 = vmatprep.subr.bf16.mxu0 %v2491_v37 }
  0xa4   : > { %2377 = vmatprep.subr.bf16.mxu1 %v2491_v37 }
  0xa6   : > { %2360 = vmatpush3.bf16.msra.mxu0 %v2491_v37 }
  0xa7   : > { %2385 = vmatpush3.bf16.msra.mxu1 %v2491_v37  ;;  %2361 = vmatprep.subr.bf16.mxu0 %v2492_v24 }
  0xa8   : > { %2378 = vmatprep.subr.bf16.mxu1 %v2492_v24 }
  0xaa   : > { %2362 = vmatpush3.bf16.msra.mxu0 %v2492_v24 }
  0xab   : > { %2386 = vmatpush3.bf16.msra.mxu1 %v2492_v24 }
  0xad   : > { %2364 = vmatmul.mubr.bf16.vlgmr.msra.gmra.mxu0 %v2862_v4 }
  0xae   : > { %2368 = vmatmul.mubr.bf16.vlgmr.msra.gmra.mxu1 %v1478_v53 }
  0xed   : > { %v2173_v8 = vpop.f32.mrf.mxu0 }
  0xee   : > { %v2197_v32 = vpop.f32.mrf.mxu1 }
  0xef   : > { %v435_v63 = vpop.f32.mrf.mxu0  ;;  %v557_v21 = vadd.f32 %v2197_v32, %v2173_v8 }
  0xf0   : > { %v548_v62 = vpop.f32.mrf.mxu1 }
  0xf1   : > { %v2174_v56 = vpop.f32.mrf.mxu0  ;;  %v549_v10 = vadd.f32 %v548_v62, %v435_v63 }
  0xf2   : > { %v2198_v40 = vpop.f32.mrf.mxu1 }
  0xf3   : > { %v438_v38 = vpop.f32.mrf.mxu0  ;;  %v560_v34 = vadd.f32 %v2198_v40, %v2174_v56 }
  0xf4   : > { %v551_v2 = vpop.f32.mrf.mxu1 }
  0xf5   : > { %v2177_v39 = vpop.f32.mrf.mxu0 }
  0xf6   : > { %v2201_v42 = vpop.f32.mrf.mxu1 }
  0xf7   : > { %v451_v41 = vpop.f32.mrf.mxu0  ;;  %v573_v3 = vadd.f32 %v2201_v42, %v2177_v39 }
  0xf8   : > { %v564_v36 = vpop.f32.mrf.mxu1 }
  0xf9   : > { %v2178_v43 = vpop.f32.mrf.mxu0  ;;  %v565_v1 = vadd.f32 %v564_v36, %v451_v41 }
  0xfa   : > { %v2202_v4 = vpop.f32.mrf.mxu1 }
  0xfb   : > { %v454_v45 = vpop.f32.mrf.mxu0 }
  0xfc   : > { %v567_v47 = vpop.f32.mrf.mxu1 }
  0xfd   : > { %v568_v63 = vadd.f32 %v567_v47, %v454_v45 }
 0x10d   : > { %v2221_v14 = vpop.f32.mrf.mxu0 }
 0x10e   : > { %v2245_v48 = vpop.f32.mrf.mxu1  ;;  %v748_v12 = vadd.f32 %v2221_v14, %v557_v21 }
 0x10f   : > { %v715_v44 = vpop.f32.mrf.mxu0 }
 0x110   : > { %v857_v49 = vpop.f32.mrf.mxu1  ;;  %v746_v37 = vadd.f32 %v715_v44, %v549_v10  ;;  %v890_v39 = vadd.f32 %v2245_v48, %v748_v12 }
 0x111   : > { %v2222_v33 = vpop.f32.mrf.mxu0 }
 0x112   : > { %v2246_v51 = vpop.f32.mrf.mxu1  ;;  %v749_v42 = vadd.f32 %v2222_v33, %v560_v34  ;;  %v888_v36 = vadd.f32 %v857_v49, %v746_v37 }
 0x113   : > { %v718_v50 = vpop.f32.mrf.mxu0 }
 0x114   : > { %v860_v23 = vpop.f32.mrf.mxu1  ;;  %v891_v44 = vadd.f32 %v2246_v51, %v749_v42 }
 0x115   : > { %v2225_v16 = vpop.f32.mrf.mxu0 }
 0x116   : > { %v2249_v30 = vpop.f32.mrf.mxu1  ;;  %v752_v29 = vadd.f32 %v2225_v16, %v573_v3 }
 0x117   : > { %v731_v17 = vpop.f32.mrf.mxu0 }
 0x118   : > { %v873_v35 = vpop.f32.mrf.mxu1  ;;  %v750_v8 = vadd.f32 %v731_v17, %v565_v1  ;;  %v894_v14 = vadd.f32 %v2249_v30, %v752_v29 }
 0x119   : > { %v2226_v26 = vpop.f32.mrf.mxu0 }
 0x11a   : > { %v2250_v6 = vpop.f32.mrf.mxu1  ;;  %v892_v16 = vadd.f32 %v873_v35, %v750_v8 }
 0x11b   : > { %v734_v53 = vpop.f32.mrf.mxu0 }
 0x11c   : > { %v876_v55 = vpop.f32.mrf.mxu1  ;;  %v751_v40 = vadd.f32 %v734_v53, %v568_v63 }
 0x11e   : > { %v893_v48 = vadd.f32 %v876_v55, %v751_v40 }
 0x12d   : > { %v2269_v7 = vpop.f32.mrf.mxu0 }
 0x12e   : > { %v2293_v61 = vpop.f32.mrf.mxu1  ;;  %v1038_v3 = vadd.f32 %v2269_v7, %v890_v39 }
 0x12f   : > { %v1005_v60 = vpop.f32.mrf.mxu0 }
 0x130   : > { %v1151_v58 = vpop.f32.mrf.mxu1 }
 0x131   : > { %v2270_v9 = vpop.f32.mrf.mxu0 }
 0x132   : > { %v2294_v11 = vpop.f32.mrf.mxu1 }
 0x133   : > { %v1008_v0 = vpop.f32.mrf.mxu0 }
 0x134   : > { %v3048_v20 = vpop.f32.mrf.mxu1 }
 0x135   : > { %v2273_v18 = vpop.f32.mrf.mxu0  ;;  %3077 = vst [vmem:[#allocation2_spill] sm:$0xff] %v3048_v20  ;;  %v576_v20 = vadd.f32 %v2202_v4, %v2178_v43 }
 0x136   : > { %v2297_v46 = vpop.f32.mrf.mxu1  ;;  %v1042_v56 = vadd.f32 %v2273_v18, %v894_v14 }
 0x137   : > { %v1021_v19 = vpop.f32.mrf.mxu0  ;;  %v753_v21 = vadd.f32 %v2226_v26, %v576_v20 }
 0x138   : > { %v1167_v59 = vpop.f32.mrf.mxu1  ;;  %v1040_v17 = vadd.f32 %v1021_v19, %v892_v16  ;;  %v1188_v33 = vadd.f32 %v2297_v46, %v1042_v56 }
 0x139   : > { %v2274_v22 = vpop.f32.mrf.mxu0  ;;  %v895_v43 = vadd.f32 %v2250_v6, %v753_v21 }
 0x13a   : > { %v2298_v27 = vpop.f32.mrf.mxu1  ;;  %v1186_v35 = vadd.f32 %v1167_v59, %v1040_v17 }
 0x13b   : > { %v1024_v13 = vpop.f32.mrf.mxu0  ;;  %v1043_v45 = vadd.f32 %v2274_v22, %v895_v43 }
 0x13c   : > { %v1170_v25 = vpop.f32.mrf.mxu1  ;;  %v1041_v53 = vadd.f32 %v1024_v13, %v893_v48  ;;  %v3080_v19 = vld [vmem:[#allocation2_spill] sm:$0xff] }
 0x13e   : > { %v1187_v46 = vadd.f32 %v1170_v25, %v1041_v53 }
 0x14d   : > { %v2317_v15 = vpop.f32.mrf.mxu0 }
 0x14e   : > { %v2341_v31 = vpop.f32.mrf.mxu1 }
 0x14f   : > { %v1290_v54 = vpop.f32.mrf.mxu0 }
 0x150   : > { %v1435_v57 = vpop.f32.mrf.mxu1 }
 0x151   : > { %v2318_v52 = vpop.f32.mrf.mxu0 }
 0x152   : > { %v3050_v28 = vpop.f32.mrf.mxu1 }
 0x153   : > { %3078 = vst [vmem:[#allocation3_spill] sm:$0xff] %v3050_v28  ;;  %v1293_v5 = vpop.f32.mrf.mxu0  ;;  %v552_v28 = vadd.f32 %v551_v2, %v438_v38  ;;  %v1184_v38 = vadd.f32 %v2293_v61, %v1038_v3  ;;  %v1039_v2 = vadd.f32 %v2270_v9, %v891_v44 }
 0x154   : > { %v3052_v24 = vpop.f32.mrf.mxu1 }
 0x155   : > { %3079 = vst [vmem:[#allocation4_spill] sm:$0xff] %v3052_v24  ;;  %v2321_v32 = vpop.f32.mrf.mxu0  ;;  %v747_v41 = vadd.f32 %v718_v50, %v552_v28  ;;  %v1036_v24 = vadd.f32 %v1005_v60, %v888_v36  ;;  %v1323_v50 = vadd.f32 %v2317_v15, %v1184_v38  ;;  %v1185_v18 = vadd.f32 %v2294_v11, %v1039_v2  ;;  %v2004_v11 = vld [vmem:[%s3075_s2] ss:$0 sm:$0xff] }
 0x156   : > { %v2345_v62 = vpop.f32.mrf.mxu1  ;;  %v1327_v7 = vadd.f32 %v2321_v32, %v1188_v33  ;;  %v1189_v60 = vadd.f32 %v2298_v27, %v1043_v45 }
 0x157   : > { %v1306_v10 = vpop.f32.mrf.mxu0  ;;  %v889_v1 = vadd.f32 %v860_v23, %v747_v41  ;;  %v1182_v30 = vadd.f32 %v1151_v58, %v1036_v24  ;;  %v1468_v61 = vadd.f32 %v2341_v31, %v1323_v50  ;;  %v1324_v9 = vadd.f32 %v2318_v52, %v1185_v18 }
 0x158   : > { %v1451_v4 = vpop.f32.mrf.mxu1  ;;  %v1325_v20 = vadd.f32 %v1306_v10, %v1186_v35  ;;  %v1472_v22 = vadd.f32 %v2345_v62, %v1327_v7 }
 0x159   : > { %v2322_v47 = vpop.f32.mrf.mxu0  ;;  %v1037_v49 = vadd.f32 %v1008_v0, %v889_v1  ;;  %v1321_v51 = vadd.f32 %v1290_v54, %v1182_v30 }
 0x15a   : > { %v2346_v26 = vpop.f32.mrf.mxu1  ;;  %v1328_v28 = vadd.f32 %v2322_v47, %v1189_v60  ;;  %v1470_v13 = vadd.f32 %v1451_v4, %v1325_v20  ;;  %v3081_v34 = vld [vmem:[#allocation3_spill] sm:$0xff] }
 0x15b   : > { %v1309_v6 = vpop.f32.mrf.mxu0  ;;  %v1183_v23 = vadd.f32 %v3080_v19, %v1037_v49  ;;  %v1466_v0 = vadd.f32 %v1435_v57, %v1321_v51  ;;  %v1469_v31 = vadd.f32 %v3081_v34, %v1324_v9 }
 0x15c   : > { %v1454_v55 = vpop.f32.mrf.mxu1  ;;  %v1326_v29 = vadd.f32 %v1309_v6, %v1187_v46  ;;  %v1473_v37 = vadd.f32 %v2346_v26, %v1328_v28  ;;  %v3082_v57 = vld [vmem:[#allocation4_spill] sm:$0xff] }
 0x15d   : > { %v1322_v15 = vadd.f32 %v1293_v5, %v1183_v23 }
 0x15e   : > { %v1471_v62 = vadd.f32 %v1454_v55, %v1326_v29 }
 0x15f   : > { %v1467_v5 = vadd.f32 %v3082_v57, %v1322_v15 }
 0x16d   : > { %v2365_v58 = vpop.f32.mrf.mxu0 }
 0x16e   : > { %v1611_v12 = vadd.f32 %v2365_v58, %v1468_v61  ;;  %v2369_v59 = vpop.f32.mrf.mxu1 }
 0x16f   : > { %v1615_v27 = vadd.f32 %v2369_v59, %v1472_v22  ;;  %v1578_v54 = vpop.f32.mrf.mxu0 }
 0x170   : > { %v1609_v52 = vadd.f32 %v1578_v54, %v1466_v0  ;;  %v1594_v25 = vpop.f32.mrf.mxu1  ;;  %v1626_v32 = vadd.f32 %v2004_v11, %v1611_v12 }
 0x171   : > { %v1613_v24 = vadd.f32 %v1594_v25, %v1470_v13  ;;  %v2366_v8 = vpop.f32.mrf.mxu0  ;;  %v1630_v63 = vadd.f32 %v2004_v11, %v1615_v27 }
 0x172   : > { %v1612_v39 = vadd.f32 %v2366_v8, %v1469_v31  ;;  %v2370_v42 = vpop.f32.mrf.mxu1  ;;  %v1624_v36 = vadd.f32 %v2004_v11, %v1609_v52  ;;  %v1634_v44 = vmax.f32 %v1626_v32, 0.0 }
 0x173   : > { %v1616_v14 = vadd.f32 %v2370_v42, %v1473_v37  ;;  %v1581_v21 = vpop.f32.mrf.mxu0  ;;  %v1628_v40 = vadd.f32 %v2004_v11, %v1613_v24  ;;  %v1638_v17 = vmax.f32 %v1630_v63, 0.0 }
 0x174   : > { %v1627_v41 = vadd.f32 %v2004_v11, %v1612_v39  ;;  %v1610_v3 = vadd.f32 %v1581_v21, %v1467_v5  ;;  %v1597_v16 = vpop.f32.mrf.mxu1  ;;  %v1632_v2 = vmax.f32 %v1624_v36, 0.0 }
 0x175   : > { %v1631_v56 = vadd.f32 %v2004_v11, %v1616_v14  ;;  %v1614_v10 = vadd.f32 %v1597_v16, %v1471_v62  ;;  %v1636_v45 = vmax.f32 %v1628_v40, 0.0 }
 0x176   : > { %v1635_v4 = vmax.f32 %v1627_v41, 0.0  ;;  %v1625_v43 = vadd.f32 %v2004_v11, %v1610_v3 }
 0x177   : > { %v1639_v1 = vmax.f32 %v1631_v56, 0.0  ;;  %v1629_v38 = vadd.f32 %v2004_v11, %v1614_v10 }
 0x178   : > { %v2032_v48 = vpack.c.bf16 %v1635_v4, %v1634_v44  ;;  %v1633_v33 = vmax.f32 %v1625_v43, 0.0 }
 0x179   : > { %v2042_v47 = vpack.c.bf16 %v1639_v1, %v1638_v17  ;;  %v1637_v30 = vmax.f32 %v1629_v38, 0.0 }
 0x17a   : > { %2044 = vst [vmem:[%s221_s6 + $0x8] sm:$0xff] %v2032_v48   ;;  %v2027_v49 = vpack.c.bf16 %v1633_v33, %v1632_v2 }
 0x17b   : > { %2046 = vst [vmem:[%s221_s6 + $0x18] sm:$0xff] %v2042_v47   ;;  %v2037_v50 = vpack.c.bf16 %v1637_v30, %v1636_v45 }
 0x17c   : > { %2028 = vst [vmem:[%s221_s6] sm:$0xff] %v2027_v49  }
 0x17d   : > { %2045 = vst [vmem:[%s221_s6 + $0x10] sm:$0xff] %v2037_v50  }
 0x17e PF: > { %s13_s14 = sadd.s32 1, %s2515_s14   ;;  %s3083_s12 = smov %s2511_s13 }
 0x17f   : > { %p10_p5 = scmp.ge.s32.totalorder %s13_s14, 4   ;;  %s3084_s13 = smov %s3086_s15 }
 0x181   :  { %12 = sbr.rel (!%p10_p5) target bundleno = 2 (0x2), region = 76 }

</bundles_post_ra>
